<compile_context>
chip_gen: v7x
topology: tpu7x:2x2x1
jax: 0.10.0
libtpu: 0.0.40
codegen_flags: <defaults>
</compile_context>

<pallas_src>
import functools

import jax
import jax.numpy as jnp
from jax.experimental import pallas as pl
from jax.experimental.pallas import tpu as pltpu

_LANE = 128     # lane width: hidden/output feature dims padded to this
_SUBLANE = 8    # sublane granularity for the batch tile


def _round_up(x, m):
    return ((x + m - 1) // m) * m


def _vmem_limit_bytes():
    """Generation-aware scoped-VMEM limit (headroom for compiler scratch)."""
    cap = None
    try:
        cap = getattr(pltpu.get_tpu_info(), "vmem_capacity_bytes", None)
    except Exception:
        cap = None
    if not cap:
        cap = 64 * 1024 * 1024                      # conservative: v7x per-TC size
    limit = min(cap - 16 * 1024 * 1024, 100 * 1024 * 1024)
    return int(max(limit, 32 * 1024 * 1024))


def _pick_batch_tile(block_b, B, din, dh_p, dout_p, x_bytes, w_bytes,
                     weight_buffers, vmem_limit):
    """Largest batch tile that keeps tiles + resident weights under budget."""
    n_buf = weight_buffers if weight_buffers else 2
    resident = n_buf * ((din * dh_p + dh_p * dh_p + dh_p * dout_p) * w_bytes
                        + (2 * dh_p + dout_p) * 4)          # biases in f32
    # per-row VMEM: double-buffered x / out tiles + f32 h1/h2 intermediates.
    per_row = 2 * din * x_bytes + 2 * dout_p * x_bytes + 2 * dh_p * 4
    budget = int(vmem_limit * 0.75) - resident
    # TODO(synk): if `budget` goes negative (huge hidden dims, e.g. bf16
    # dh=4096 on v7x), the resident-weight scheme no longer fits: add a
    # trailing "arbitrary" K grid axis tiling the hidden dim of w2/w3 with a
    # pl.when-initialized f32 VMEM accumulator instead of shrinking bb.
    bb_cap = max(_SUBLANE, budget // max(per_row, 1))
    bb = min(block_b, _round_up(B, _SUBLANE), bb_cap)
    if bb >= _LANE:
        bb = (bb // _LANE) * _LANE                   # MXU-friendly multiple of 128
    else:
        bb = max(_SUBLANE, (bb // _SUBLANE) * _SUBLANE)
    return int(bb)


def _resident_spec(shape, buffers):
    """Constant-index block: DMA'd once, stays resident across grid steps.

    Requests single buffering when supported (halves resident weight VMEM);
    falls back to the default (double-buffered) spec otherwise.
    """
    index_map = lambda i: (0,) * len(shape)
    if buffers and buffers > 0 and hasattr(pl, "Buffered"):
        try:
            return pl.BlockSpec(shape, index_map,
                                pipeline_mode=pl.Buffered(buffers))
        except TypeError:
            pass
    return pl.BlockSpec(shape, index_map)


def _mlp_kernel(x_ref, w1_ref, b1_ref, w2_ref, b2_ref, w3_ref, b3_ref, o_ref):
    """relu(relu(x@W1+b1)@W2+b2)@W3+b3 for one batch tile (f32 accumulation)."""
    op_dtype = w1_ref.dtype          # MXU operand dtype (bf16 by default)

    x = x_ref[...]
    if x.dtype != op_dtype:
        x = x.astype(op_dtype)

    # fc1 + ReLU: MXU in op_dtype, f32 accumulate; bias/ReLU in f32 on the VPU.
    h1 = jnp.dot(x, w1_ref[...], preferred_element_type=jnp.float32)
    h1 = jnp.maximum(h1 + b1_ref[...], 0.0)

    # fc2 + ReLU
    h2 = jnp.dot(h1.astype(op_dtype), w2_ref[...],
                 preferred_element_type=jnp.float32)
    h2 = jnp.maximum(h2 + b2_ref[...], 0.0)

    # fc3
    out = jnp.dot(h2.astype(op_dtype), w3_ref[...],
                  preferred_element_type=jnp.float32)
    out = out + b3_ref[...]

    o_ref[...] = out.astype(o_ref.dtype)


def prepare_params(w1, b1, w2, b2, w3, b3, op_dtype=jnp.bfloat16):
    """One-time padding/cast of parameters. Call ONCE, not per forward pass.

    Pads the hidden/output feature dims to multiples of 128 (lane-dense MXU
    operands and lane-dense output stores); the input dim stays unpadded.
    Weights are cast to `op_dtype` (bf16 recommended); biases to f32.
    Padding is exact for this network (zero rows/cols + zero bias + ReLU).
    """
    input_dim, hidden_dim = w1.shape
    output_dim = w3.shape[1]
    dh_p = _round_up(hidden_dim, _LANE)
    dout_p = _round_up(output_dim, _LANE)

    def pad2(a, rows, cols):
        pr, pc = rows - a.shape[0], cols - a.shape[1]
        if pr or pc:
            a = jnp.pad(a, ((0, pr), (0, pc)))
        return a

    w1p = pad2(w1, input_dim, dh_p).astype(op_dtype)
    b1p = pad2(b1, 1, dh_p).astype(jnp.float32)
    w2p = pad2(w2, dh_p, dh_p).astype(op_dtype)
    b2p = pad2(b2, 1, dh_p).astype(jnp.float32)
    w3p = pad2(w3, dh_p, dout_p).astype(op_dtype)
    b3p = pad2(b3, 1, dout_p).astype(jnp.float32)
    return w1p, b1p, w2p, b2p, w3p, b3p


@functools.partial(jax.jit,
                   static_argnames=("output_dim", "block_b", "weight_buffers"))
def advanced_feed_forward(x, w1p, b1p, w2p, b2p, w3p, b3p, *,
                          output_dim, block_b=512, weight_buffers=1):
    """x: [B, input_dim]; padded params from prepare_params(). -> [B, output_dim]."""
    B, din = x.shape
    dh_p = w1p.shape[1]
    dout_p = w3p.shape[1]

    vmem_limit = _vmem_limit_bytes()
    bb = _pick_batch_tile(block_b, B, din, dh_p, dout_p,
                          x.dtype.itemsize, w1p.dtype.itemsize,
                          weight_buffers, vmem_limit)
    grid = (pl.cdiv(B, bb),)    # partial last batch tile handled by masking

    out = pl.pallas_call(
        _mlp_kernel,
        out_shape=jax.ShapeDtypeStruct((B, dout_p), x.dtype),
        grid_spec=pltpu.PrefetchScalarGridSpec(
            num_scalar_prefetch=0,
            grid=grid,
            in_specs=[
                # streamed batch tile of activations (input dim unpadded: block
                # dim == full array dim, so no wrapper-side pad copy of x)
                pl.BlockSpec((bb, din), lambda i: (i, 0)),
                # weights / biases: constant block index -> DMA'd once, resident
                _resident_spec((din, dh_p), weight_buffers),
                _resident_spec((1, dh_p), weight_buffers),
                _resident_spec((dh_p, dh_p), weight_buffers),
                _resident_spec((1, dh_p), weight_buffers),
                _resident_spec((dh_p, dout_p), weight_buffers),
                _resident_spec((1, dout_p), weight_buffers),
            ],
            out_specs=pl.BlockSpec((bb, dout_p), lambda i: (i, 0)),
        ),
        compiler_params=pltpu.CompilerParams(
            # TODO(synk): on v7x, if profiling shows one TensorCore idle,
            # switch this axis to pltpu.CORE_PARALLEL (or add an explicit
            # leading core axis of size 2 with a per-core batch split).
            dimension_semantics=("parallel",),
            vmem_limit_bytes=vmem_limit,
        ),
    )(x, w1p, b1p, w2p, b2p, w3p, b3p)

    if dout_p != output_dim:
        out = out[:, :output_dim]    # strip lane padding (stores stayed lane-dense)
    return out


def _init_linear(key, in_features, out_features):
    """Deterministic init mimicking nn.Linear (uniform in +-1/sqrt(in))."""
    kw, kb = jax.random.split(key)
    bound = 1.0 / jnp.sqrt(jnp.float32(in_features))
    # Stored as [in, out] (transpose of PyTorch's [out, in]).
    w = jax.random.uniform(kw, (in_features, out_features), jnp.float32,
                           minval=-bound, maxval=bound)
    b = jax.random.uniform(kb, (1, out_features), jnp.float32,
                           minval=-bound, maxval=bound)
    return w, b


def _reference_f32(x, w1, b1, w2, b2, w3, b3):
    h1 = jnp.maximum(x @ w1 + b1, 0.0)
    h2 = jnp.maximum(h1 @ w2 + b2, 0.0)
    return h2 @ w3 + b3


def _reference_mixed(x, w1p, b1p, w2p, b2p, w3p, b3p, output_dim):
    """Reference that mirrors the kernel's cast pattern (padded params)."""
    od = w1p.dtype
    h1 = jnp.maximum(
        jnp.dot(x.astype(od), w1p, preferred_element_type=jnp.float32) + b1p, 0.0)
    h2 = jnp.maximum(
        jnp.dot(h1.astype(od), w2p, preferred_element_type=jnp.float32) + b2p, 0.0)
    out = jnp.dot(h2.astype(od), w3p, preferred_element_type=jnp.float32) + b3p
    return out[:, :output_dim]


if __name__ == "__main__":
    # Small shapes; hidden/output dims deliberately NOT multiples of 128 so the
    # lane-padding path is exercised, and batch not a multiple of the tile so
    # the masked partial last tile is exercised (block_b=128 -> 2 grid steps).
    batch, input_dim, hidden_dim, output_dim = 200, 48, 96, 24

    key = jax.random.PRNGKey(0)
    kx, k1, k2, k3 = jax.random.split(key, 4)
    x = jax.random.normal(kx, (batch, input_dim), jnp.float32)
    w1, b1 = _init_linear(k1, input_dim, hidden_dim)
    w2, b2 = _init_linear(k2, hidden_dim, hidden_dim)
    w3, b3 = _init_linear(k3, hidden_dim, output_dim)

    # --- bf16-weight path (recommended: MXU-rate operands, f32 accumulation) ---
    params_bf16 = prepare_params(w1, b1, w2, b2, w3, b3, op_dtype=jnp.bfloat16)
    weight_buffers = 1
    try:
        out_bf16 = jax.block_until_ready(
            advanced_feed_forward(x, *params_bf16, output_dim=output_dim,
                                  block_b=128, weight_buffers=weight_buffers))
    except Exception:
        # This jax build rejects single-buffered resident specs -> fall back to
        # default double-buffering (correctness identical, more VMEM).
        weight_buffers = 0
        out_bf16 = jax.block_until_ready(
            advanced_feed_forward(x, *params_bf16, output_dim=output_dim,
                                  block_b=128, weight_buffers=weight_buffers))

    assert out_bf16.shape == (batch, output_dim)
    ref_mixed = _reference_mixed(x, *params_bf16, output_dim=output_dim)
    assert jnp.allclose(out_bf16, ref_mixed, atol=1e-3, rtol=1e-3)
    # Mixed-precision drift vs. the pure f32 module is expected and documented:
    ref_f32 = _reference_f32(x, w1, b1, w2, b2, w3, b3)
    assert jnp.allclose(out_bf16, ref_f32, atol=1e-1, rtol=1e-1)

    # --- f32-weight path: exact check against the f32 reference ---
    params_f32 = prepare_params(w1, b1, w2, b2, w3, b3, op_dtype=jnp.float32)
    out_f32 = jax.block_until_ready(
        advanced_feed_forward(x, *params_f32, output_dim=output_dim,
                              block_b=128, weight_buffers=weight_buffers))
    assert out_f32.shape == (batch, output_dim)
    assert jnp.allclose(out_f32, ref_f32, atol=1e-4, rtol=1e-4)

    print("KERNEL_OK")
</pallas_src>

<mosaic_0001>
module attributes {stable_mosaic.version = 11 : i64} {
  func.func @_mlp_kernel(%arg0: i32, %arg1: memref<128x48xf32, #tpu.memory_space<vmem>>, %arg2: memref<48x128xbf16, #tpu.memory_space<vmem>>, %arg3: memref<1x128xf32, #tpu.memory_space<vmem>>, %arg4: memref<128x128xbf16, #tpu.memory_space<vmem>>, %arg5: memref<1x128xf32, #tpu.memory_space<vmem>>, %arg6: memref<128x128xbf16, #tpu.memory_space<vmem>>, %arg7: memref<1x128xf32, #tpu.memory_space<vmem>>, %arg8: memref<128x128xf32, #tpu.memory_space<vmem>>) attributes {dimension_semantics = [#tpu.dimension_semantics<parallel>], iteration_bounds = array<i64: 2>, scalar_prefetch = 0 : i64, scratch_operands = 0 : i64, tpu.core_type = #tpu.core_type<tc>, window_params = [{transform_indices = @transform_0, window_bounds = array<i64: 128, 48>}, {pipeline_mode = #tpu.pipeline_mode<synchronous>, transform_indices = @transform_1, window_bounds = array<i64: 48, 128>}, {pipeline_mode = #tpu.pipeline_mode<synchronous>, transform_indices = @transform_2, window_bounds = array<i64: 1, 128>}, {pipeline_mode = #tpu.pipeline_mode<synchronous>, transform_indices = @transform_3, window_bounds = array<i64: 128, 128>}, {pipeline_mode = #tpu.pipeline_mode<synchronous>, transform_indices = @transform_4, window_bounds = array<i64: 1, 128>}, {pipeline_mode = #tpu.pipeline_mode<synchronous>, transform_indices = @transform_5, window_bounds = array<i64: 128, 128>}, {pipeline_mode = #tpu.pipeline_mode<synchronous>, transform_indices = @transform_6, window_bounds = array<i64: 1, 128>}, {transform_indices = @transform_7, window_bounds = array<i64: 128, 128>}]} {
    %c0 = arith.constant 0 : index
    %c0_0 = arith.constant 0 : index
    %0 = vector.load %arg1[%c0, %c0_0] : memref<128x48xf32, #tpu.memory_space<vmem>>, vector<128x48xf32>
    %1 = arith.truncf %0 : vector<128x48xf32> to vector<128x48xbf16>
    %c0_1 = arith.constant 0 : index
    %c0_2 = arith.constant 0 : index
    %2 = vector.load %arg2[%c0_1, %c0_2] : memref<48x128xbf16, #tpu.memory_space<vmem>>, vector<48x128xbf16>
    %cst = arith.constant dense<0.000000e+00> : vector<128x128xf32>
    %3 = tpu.matmul %1, %2, %cst {dimension_numbers = #tpu.dot_dimension_numbers<[1], [0], [0], [1], [0, 0, 1, 1], [], []>} : vector<128x48xbf16>, vector<48x128xbf16>, vector<128x128xf32> -> vector<128x128xf32>
    %c0_3 = arith.constant 0 : index
    %c0_4 = arith.constant 0 : index
    %4 = vector.load %arg3[%c0_3, %c0_4] : memref<1x128xf32, #tpu.memory_space<vmem>>, vector<1x128xf32>
    %5 = vector.broadcast %4 : vector<1x128xf32> to vector<128x128xf32>
    %6 = arith.addf %3, %5 : vector<128x128xf32>
    %cst_5 = arith.constant 0.000000e+00 : f32
    %7 = vector.broadcast %cst_5 : f32 to vector<128x128xf32>
    %8 = arith.maximumf %6, %7 : vector<128x128xf32>
    %9 = arith.truncf %8 : vector<128x128xf32> to vector<128x128xbf16>
    %c0_6 = arith.constant 0 : index
    %c0_7 = arith.constant 0 : index
    %10 = vector.load %arg4[%c0_6, %c0_7] : memref<128x128xbf16, #tpu.memory_space<vmem>>, vector<128x128xbf16>
    %cst_8 = arith.constant dense<0.000000e+00> : vector<128x128xf32>
    %11 = tpu.matmul %9, %10, %cst_8 {dimension_numbers = #tpu.dot_dimension_numbers<[1], [0], [0], [1], [0, 0, 1, 1], [], []>} : vector<128x128xbf16>, vector<128x128xbf16>, vector<128x128xf32> -> vector<128x128xf32>
    %c0_9 = arith.constant 0 : index
    %c0_10 = arith.constant 0 : index
    %12 = vector.load %arg5[%c0_9, %c0_10] : memref<1x128xf32, #tpu.memory_space<vmem>>, vector<1x128xf32>
    %13 = vector.broadcast %12 : vector<1x128xf32> to vector<128x128xf32>
    %14 = arith.addf %11, %13 : vector<128x128xf32>
    %cst_11 = arith.constant 0.000000e+00 : f32
    %15 = vector.broadcast %cst_11 : f32 to vector<128x128xf32>
    %16 = arith.maximumf %14, %15 : vector<128x128xf32>
    %17 = arith.truncf %16 : vector<128x128xf32> to vector<128x128xbf16>
    %c0_12 = arith.constant 0 : index
    %c0_13 = arith.constant 0 : index
    %18 = vector.load %arg6[%c0_12, %c0_13] : memref<128x128xbf16, #tpu.memory_space<vmem>>, vector<128x128xbf16>
    %cst_14 = arith.constant dense<0.000000e+00> : vector<128x128xf32>
    %19 = tpu.matmul %17, %18, %cst_14 {dimension_numbers = #tpu.dot_dimension_numbers<[1], [0], [0], [1], [0, 0, 1, 1], [], []>} : vector<128x128xbf16>, vector<128x128xbf16>, vector<128x128xf32> -> vector<128x128xf32>
    %c0_15 = arith.constant 0 : index
    %c0_16 = arith.constant 0 : index
    %20 = vector.load %arg7[%c0_15, %c0_16] : memref<1x128xf32, #tpu.memory_space<vmem>>, vector<1x128xf32>
    %21 = vector.broadcast %20 : vector<1x128xf32> to vector<128x128xf32>
    %22 = arith.addf %19, %21 : vector<128x128xf32>
    %c0_17 = arith.constant 0 : index
    %c0_18 = arith.constant 0 : index
    %23 = vector.load %arg8[%c0_17, %c0_18] : memref<128x128xf32, #tpu.memory_space<vmem>>, vector<128x128xf32>
    tpu.vector_store %arg8[%c0_17, %c0_18], %22 {strides = array<i32>} : memref<128x128xf32, #tpu.memory_space<vmem>>, vector<128x128xf32>,
    return
  }
  func.func @transform_0(%arg0: i32) -> (i32, i32) {
    %c0_i32 = arith.constant 0 : i32
    %c0_i32_0 = arith.constant 0 : i32
    return %arg0, %c0_i32 : i32, i32
  }
  func.func @transform_1(%arg0: i32) -> (i32, i32) {
    %c0_i32 = arith.constant 0 : i32
    %c0_i32_0 = arith.constant 0 : i32
    %c0_i32_1 = arith.constant 0 : i32
    return %c0_i32, %c0_i32_0 : i32, i32
  }
  func.func @transform_2(%arg0: i32) -> (i32, i32) {
    %c0_i32 = arith.constant 0 : i32
    %c0_i32_0 = arith.constant 0 : i32
    %c0_i32_1 = arith.constant 0 : i32
    return %c0_i32, %c0_i32_0 : i32, i32
  }
  func.func @transform_3(%arg0: i32) -> (i32, i32) {
    %c0_i32 = arith.constant 0 : i32
    %c0_i32_0 = arith.constant 0 : i32
    %c0_i32_1 = arith.constant 0 : i32
    return %c0_i32, %c0_i32_0 : i32, i32
  }
  func.func @transform_4(%arg0: i32) -> (i32, i32) {
    %c0_i32 = arith.constant 0 : i32
    %c0_i32_0 = arith.constant 0 : i32
    %c0_i32_1 = arith.constant 0 : i32
    return %c0_i32, %c0_i32_0 : i32, i32
  }
  func.func @transform_5(%arg0: i32) -> (i32, i32) {
    %c0_i32 = arith.constant 0 : i32
    %c0_i32_0 = arith.constant 0 : i32
    %c0_i32_1 = arith.constant 0 : i32
    return %c0_i32, %c0_i32_0 : i32, i32
  }
  func.func @transform_6(%arg0: i32) -> (i32, i32) {
    %c0_i32 = arith.constant 0 : i32
    %c0_i32_0 = arith.constant 0 : i32
    %c0_i32_1 = arith.constant 0 : i32
    return %c0_i32, %c0_i32_0 : i32, i32
  }
  func.func @transform_7(%arg0: i32) -> (i32, i32) {
    %c0_i32 = arith.constant 0 : i32
    %c0_i32_0 = arith.constant 0 : i32
    return %arg0, %c0_i32 : i32, i32
  }
}

module attributes {stable_mosaic.version = 11 : i64} {
  func.func @_mlp_kernel(%arg0: i32, %arg1: memref<128x48xf32, #tpu.memory_space<vmem>>, %arg2: memref<48x128xbf16, #tpu.memory_space<vmem>>, %arg3: memref<1x128xf32, #tpu.memory_space<vmem>>, %arg4: memref<128x128xbf16, #tpu.memory_space<vmem>>, %arg5: memref<1x128xf32, #tpu.memory_space<vmem>>, %arg6: memref<128x128xbf16, #tpu.memory_space<vmem>>, %arg7: memref<1x128xf32, #tpu.memory_space<vmem>>, %arg8: memref<128x128xf32, #tpu.memory_space<vmem>>) attributes {dimension_semantics = [#tpu.dimension_semantics<parallel>], iteration_bounds = array<i64: 2>, scalar_prefetch = 0 : i64, scratch_operands = 0 : i64, tpu.core_type = #tpu.core_type<tc>, window_params = [{transform_indices = @transform_0, window_bounds = array<i64: 128, 48>}, {pipeline_mode = #tpu.pipeline_mode<synchronous>, transform_indices = @transform_1, window_bounds = array<i64: 48, 128>}, {pipeline_mode = #tpu.pipeline_mode<synchronous>, transform_indices = @transform_2, window_bounds = array<i64: 1, 128>}, {pipeline_mode = #tpu.pipeline_mode<synchronous>, transform_indices = @transform_3, window_bounds = array<i64: 128, 128>}, {pipeline_mode = #tpu.pipeline_mode<synchronous>, transform_indices = @transform_4, window_bounds = array<i64: 1, 128>}, {pipeline_mode = #tpu.pipeline_mode<synchronous>, transform_indices = @transform_5, window_bounds = array<i64: 128, 128>}, {pipeline_mode = #tpu.pipeline_mode<synchronous>, transform_indices = @transform_6, window_bounds = array<i64: 1, 128>}, {transform_indices = @transform_7, window_bounds = array<i64: 128, 128>}]} {
    %c0 = arith.constant 0 : index
    %c0_0 = arith.constant 0 : index
    %0 = vector.load %arg1[%c0, %c0_0] : memref<128x48xf32, #tpu.memory_space<vmem>>, vector<128x48xf32>
    %1 = arith.truncf %0 : vector<128x48xf32> to vector<128x48xbf16>
    %c0_1 = arith.constant 0 : index
    %c0_2 = arith.constant 0 : index
    %2 = vector.load %arg2[%c0_1, %c0_2] : memref<48x128xbf16, #tpu.memory_space<vmem>>, vector<48x128xbf16>
    %cst = arith.constant dense<0.000000e+00> : vector<128x128xf32>
    %3 = tpu.matmul %1, %2, %cst {dimension_numbers = #tpu.dot_dimension_numbers<[1], [0], [0], [1], [0, 0, 1, 1], [], []>} : vector<128x48xbf16>, vector<48x128xbf16>, vector<128x128xf32> -> vector<128x128xf32>
    %c0_3 = arith.constant 0 : index
    %c0_4 = arith.constant 0 : index
    %4 = vector.load %arg3[%c0_3, %c0_4] : memref<1x128xf32, #tpu.memory_space<vmem>>, vector<1x128xf32>
    %5 = vector.broadcast %4 : vector<1x128xf32> to vector<128x128xf32>
    %6 = arith.addf %3, %5 : vector<128x128xf32>
    %cst_5 = arith.constant 0.000000e+00 : f32
    %7 = vector.broadcast %cst_5 : f32 to vector<128x128xf32>
    %8 = arith.maximumf %6, %7 : vector<128x128xf32>
    %9 = arith.truncf %8 : vector<128x128xf32> to vector<128x128xbf16>
    %c0_6 = arith.constant 0 : index
    %c0_7 = arith.constant 0 : index
    %10 = vector.load %arg4[%c0_6, %c0_7] : memref<128x128xbf16, #tpu.memory_space<vmem>>, vector<128x128xbf16>
    %cst_8 = arith.constant dense<0.000000e+00> : vector<128x128xf32>
    %11 = tpu.matmul %9, %10, %cst_8 {dimension_numbers = #tpu.dot_dimension_numbers<[1], [0], [0], [1], [0, 0, 1, 1], [], []>} : vector<128x128xbf16>, vector<128x128xbf16>, vector<128x128xf32> -> vector<128x128xf32>
    %c0_9 = arith.constant 0 : index
    %c0_10 = arith.constant 0 : index
    %12 = vector.load %arg5[%c0_9, %c0_10] : memref<1x128xf32, #tpu.memory_space<vmem>>, vector<1x128xf32>
    %13 = vector.broadcast %12 : vector<1x128xf32> to vector<128x128xf32>
    %14 = arith.addf %11, %13 : vector<128x128xf32>
    %cst_11 = arith.constant 0.000000e+00 : f32
    %15 = vector.broadcast %cst_11 : f32 to vector<128x128xf32>
    %16 = arith.maximumf %14, %15 : vector<128x128xf32>
    %17 = arith.truncf %16 : vector<128x128xf32> to vector<128x128xbf16>
    %c0_12 = arith.constant 0 : index
    %c0_13 = arith.constant 0 : index
    %18 = vector.load %arg6[%c0_12, %c0_13] : memref<128x128xbf16, #tpu.memory_space<vmem>>, vector<128x128xbf16>
    %cst_14 = arith.constant dense<0.000000e+00> : vector<128x128xf32>
    %19 = tpu.matmul %17, %18, %cst_14 {dimension_numbers = #tpu.dot_dimension_numbers<[1], [0], [0], [1], [0, 0, 1, 1], [], []>} : vector<128x128xbf16>, vector<128x128xbf16>, vector<128x128xf32> -> vector<128x128xf32>
    %c0_15 = arith.constant 0 : index
    %c0_16 = arith.constant 0 : index
    %20 = vector.load %arg7[%c0_15, %c0_16] : memref<1x128xf32, #tpu.memory_space<vmem>>, vector<1x128xf32>
    %21 = vector.broadcast %20 : vector<1x128xf32> to vector<128x128xf32>
    %22 = arith.addf %19, %21 : vector<128x128xf32>
    %c0_17 = arith.constant 0 : index
    %c0_18 = arith.constant 0 : index
    %23 = vector.load %arg8[%c0_17, %c0_18] : memref<128x128xf32, #tpu.memory_space<vmem>>, vector<128x128xf32>
    tpu.vector_store %arg8[%c0_17, %c0_18], %22 {strides = array<i32>} : memref<128x128xf32, #tpu.memory_space<vmem>>, vector<128x128xf32>,
    return
  }
  func.func @transform_0(%arg0: i32) -> (i32, i32) {
    %c0_i32 = arith.constant 0 : i32
    %c0_i32_0 = arith.constant 0 : i32
    return %arg0, %c0_i32 : i32, i32
  }
  func.func @transform_1(%arg0: i32) -> (i32, i32) {
    %c0_i32 = arith.constant 0 : i32
    %c0_i32_0 = arith.constant 0 : i32
    %c0_i32_1 = arith.constant 0 : i32
    return %c0_i32, %c0_i32_0 : i32, i32
  }
  func.func @transform_2(%arg0: i32) -> (i32, i32) {
    %c0_i32 = arith.constant 0 : i32
    %c0_i32_0 = arith.constant 0 : i32
    %c0_i32_1 = arith.constant 0 : i32
    return %c0_i32, %c0_i32_0 : i32, i32
  }
  func.func @transform_3(%arg0: i32) -> (i32, i32) {
    %c0_i32 = arith.constant 0 : i32
    %c0_i32_0 = arith.constant 0 : i32
    %c0_i32_1 = arith.constant 0 : i32
    return %c0_i32, %c0_i32_0 : i32, i32
  }
  func.func @transform_4(%arg0: i32) -> (i32, i32) {
    %c0_i32 = arith.constant 0 : i32
    %c0_i32_0 = arith.constant 0 : i32
    %c0_i32_1 = arith.constant 0 : i32
    return %c0_i32, %c0_i32_0 : i32, i32
  }
  func.func @transform_5(%arg0: i32) -> (i32, i32) {
    %c0_i32 = arith.constant 0 : i32
    %c0_i32_0 = arith.constant 0 : i32
    %c0_i32_1 = arith.constant 0 : i32
    return %c0_i32, %c0_i32_0 : i32, i32
  }
  func.func @transform_6(%arg0: i32) -> (i32, i32) {
    %c0_i32 = arith.constant 0 : i32
    %c0_i32_0 = arith.constant 0 : i32
    %c0_i32_1 = arith.constant 0 : i32
    return %c0_i32, %c0_i32_0 : i32, i32
  }
  func.func @transform_7(%arg0: i32) -> (i32, i32) {
    %c0_i32 = arith.constant 0 : i32
    %c0_i32_0 = arith.constant 0 : i32
    return %arg0, %c0_i32 : i32, i32
  }
}

</mosaic_0001>

<bundles_post_ra>
// kernel: advanced_feed_forward.1
= control target key start
LH: loop header
LB: loop body
LE: loop exit
PB: predicated region body
PF: predicated region fallthrough
CT: control target
= control target key end

     0   :  { %s1574_s24 = smov 0   ;;  %s1576_s25 = smov 0   ;;  %s1822_s0 = inlined_call_operand.vmem [shape: f32[200,48], index: 0, kind: input, shape index: {}]   ;;  %s1823_s1 = inlined_call_operand.vmem [shape: bf16[48,128], index: 1, kind: input, shape index: {}]   ;;  %s1824_s2 = inlined_call_operand.vmem [shape: f32[1,128], index: 2, kind: input, shape index: {}]   ;;  %s1825_s3 = inlined_call_operand.vmem [shape: bf16[128,128], index: 3, kind: input, shape index: {}]   ;;  %s1826_s4 = inlined_call_operand.vmem [shape: f32[1,128], index: 4, kind: input, shape index: {}]   ;;  %s1827_s5 = inlined_call_operand.vmem [shape: bf16[128,128], index: 5, kind: input, shape index: {}]   ;;  %s1828_s6 = inlined_call_operand.vmem [shape: f32[1,128], index: 6, kind: input, shape index: {}]   ;;  %s1829_s7 = inlined_call_operand.vmem [shape: f32[200,128], index: 7, kind: output, shape index: {}]  }
   0x1   :  { %s1578_s26 = smov 0  }
   0x2 LB: > { %s1587_s27 = sadd.s32 4294967295, %s1500_s26   ;;  %s1589_s28 = sadd.s32 1, %s1500_s26   ;;  %s1500_s26 = sphi %s1578_s26, %s1836_s26   ;;  %s1496_s25 = sphi %s1576_s25, %s1835_s25   ;;  %s1492_s24 = sphi %s1574_s24, %s1834_s24  }
   0x3   : > { %s173_s29 = ssub.s32 %s1500_s26, %s1589_s28  ;;  %s176_s30 = sadd.s32 1, %s1496_s25 }
   0x4   : > { %p174_p0 = scmp.eq.s32.totalorder %s173_s29, 0  ;;  %p186_p1 = scmp.ne.s32.totalorder %s1496_s25, %s1492_s24 }
   0x5   : > { %p187_p2 = scmp.eq.s32.totalorder %s1587_s27, 1  ;;  %p1156_p3 = scmp.ge.s32.totalorder %s1500_s26, 1 }
   0x6   : > { %s1597_s8 = scalar_select %p174_p0, %s1496_s25, %s176_s30  }
   0x7   : > { %p1599_p4 = por %p187_p2, %p186_p1  ;;  %p246_p5 = scmp.lt.s32.totalorder %s1500_s26, 3 }
   0x9   : > { %p247_p6 = pnand %p1156_p3, %p246_p5 }
   0xa   : > { %v1427_v0 = vld [vmem:[%s1823_s1] sm:$0xff] (!%p247_p6)   ;;  %s1607_s12 = sshll.u32 (!%p247_p6), %s1587_s27, 4  ;;  %v1428_v1 = vld [vmem:[%s1823_s1 + $0x8] sm:$0xff] (!%p247_p6)   ;;  %v1429_v2 = vld [vmem:[%s1823_s1 + $0x10] sm:$0xff] (!%p247_p6)   ;;  %vm356_vm0 = vcmask (!%p247_p6), 392192   ;;  %s278_s30 = sand.u32 (!%p247_p6), 1, %s1492_s24  }
   0xb   : > { %250 = sbr.rel (%p247_p6) target bundleno = 761 (0x2f9), region = 48  ;;  %p286_p7 = scmp.lt.s32.totalorder (!%p247_p6), %s1607_s12, 24  ;;  %1253 = vmatprep.subr.bf16.mxu0 (!%p247_p6), %v1427_v0  ;;  %v1430_v3 = vld [vmem:[%s1825_s3] sm:$0xff] (!%p247_p6)   ;;  %v1431_v4 = vld [vmem:[%s1825_s3 + $0x8] sm:$0xff] (!%p247_p6)   ;;  %v1432_v5 = vld [vmem:[%s1825_s3 + $0x10] sm:$0xff] (!%p247_p6)  }
   0xc   : > { %1254 = vmatpush3.bf16.msra.mxu0 (!%p247_p6), %v1427_v0  ;;  %1275 = vmatprep.subr.bf16.mxu1 (!%p247_p6), %v1430_v3  ;;  %v1433_v15 = vld [vmem:[%s1825_s3 + $0x18] sm:$0xff] (!%p247_p6)   ;;  %v1434_v20 = vld [vmem:[%s1825_s3 + $0x20] sm:$0xff] (!%p247_p6)   ;;  %v1435_v21 = vld [vmem:[%s1825_s3 + $0x28] sm:$0xff] (!%p247_p6)   ;;  %s1157_s10 = sshll.u32 (!%p247_p6), %s278_s30, 7 }
   0xd   : > { %1255 = vmatprep.subr.bf16.mxu0 (!%p247_p6), %v1428_v1  ;;  %1276 = vmatpush3.bf16.msra.mxu1 (!%p247_p6), %v1430_v3  ;;  %v1436_v33 = vld [vmem:[%s1825_s3 + $0x30] sm:$0xff] (!%p247_p6)   ;;  %v1437_v34 = vld [vmem:[%s1825_s3 + $0x38] sm:$0xff] (!%p247_p6)   ;;  %v1438_v35 = vld [vmem:[%s1827_s5] sm:$0xff] (!%p247_p6)   ;;  %s1704_s14 = scalar_lea.vmem (!%p247_p6), [#allocation2], %s1157_s10  }
   0xe   : > { %1277 = vmatprep.subr.bf16.mxu1 (!%p247_p6), %v1431_v4  ;;  %v1439_v36 = vld [vmem:[%s1827_s5 + $0x8] sm:$0xff] (!%p247_p6)   ;;  %v1440_v37 = vld [vmem:[%s1827_s5 + $0x10] sm:$0xff] (!%p247_p6)   ;;  %v1441_v38 = vld [vmem:[%s1827_s5 + $0x18] sm:$0xff] (!%p247_p6)  }
   0xf   : > { %v1442_v39 = vld [vmem:[%s1827_s5 + $0x20] sm:$0xff] (!%p247_p6)   ;;  %v1443_v40 = vld [vmem:[%s1827_s5 + $0x28] sm:$0xff] (!%p247_p6)  }
  0x10   : > { %1256 = vmatpush3.bf16.msra.mxu0 (!%p247_p6), %v1428_v1  ;;  %v1160_v41 = vld [vmem:[%s1824_s2] ss:$0 sm:$0xff] (!%p247_p6) }
  0x11   : > { %1257 = vmatprep.subr.bf16.mxu0 (!%p247_p6), %v1429_v2  ;;  %1278 = vmatpush3.bf16.msra.mxu1 (!%p247_p6), %v1431_v4 }
  0x12   : > { %s287_s17 = scalar_select %p286_p7, %s1607_s12, 24  ;;  %1279 = vmatprep.subr.bf16.mxu1 %v1432_v5 }
  0x13   : > { %s886_s24 = ssub.s32 (%p1599_p4), 25, %s1607_s12  ;;  %s1207_s15 = sshll.u32 (%p1599_p4), %s1587_s27, 7 }
  0x14   : > { %s1159_s22 = sshll.u32 %s287_s17, 3  ;;  %1258 = vmatpush3.bf16.msra.mxu0 %v1429_v2  ;;  %p887_p8 = scmp.lt.s32.totalorder (%p1599_p4), %s886_s24, 16 }
  0x15   : > { %s1626_s29 = scalar_lea.vmem %s1822_s0, %s1159_s22  ;;  %1280 = vmatpush3.bf16.msra.mxu1 %v1432_v5  ;;  %1307 = vmatprep.subr.bf16.mxu0 %v1438_v35  ;;  %s1729_s18 = scalar_lea.vmem (%p1599_p4), %s1829_s7, %s1207_s15  }
  0x16   : > { %v301_v6 = vld [vmem:[%s1626_s29] sm:$0xff]  ;;  %v302_v7 = vld [vmem:[%s1626_s29 + $0x8] sm:$0xff]  ;;  %v303_v8 = vld [vmem:[%s1626_s29 + $0x10] sm:$0xff]  ;;  %1281 = vmatprep.subr.bf16.mxu1 %v1433_v15 }
  0x17   : > { %v317_v9 = vpack.c.bf16 %v302_v7, %v301_v6  ;;  %v304_v10 = vld [vmem:[%s1626_s29 + $0x18] sm:$0xff]  ;;  %v305_v11 = vld [vmem:[%s1626_s29 + $0x20] sm:$0xff]  ;;  %v306_v12 = vld [vmem:[%s1626_s29 + $0x28] sm:$0xff] }
  0x18   : > { %v318_v13 = vpack.c.bf16 %v304_v10, %v303_v8  ;;  %v319_v14 = vpack.c.bf16 %v306_v12, %v305_v11  ;;  %v307_v16 = vld [vmem:[%s1626_s29 + $0x30] sm:$0xff]  ;;  %v308_v17 = vld [vmem:[%s1626_s29 + $0x38] sm:$0xff]  ;;  %v309_v18 = vld [vmem:[%s1626_s29 + $0x40] sm:$0xff] }
  0x19   : > { %1259 = vmatprep.mubr.msk.bf16.mxu0 %vm356_vm0, %v317_v9  ;;  %v310_v19 = vld [vmem:[%s1626_s29 + $0x48] sm:$0xff]  ;;  %v320_v22 = vpack.c.bf16 %v308_v17, %v307_v16  ;;  %1282 = vmatpush3.bf16.msra.mxu1 %v1433_v15  ;;  %v311_v24 = vld [vmem:[%s1626_s29 + $0x50] sm:$0xff]  ;;  %v312_v25 = vld [vmem:[%s1626_s29 + $0x58] sm:$0xff] }
  0x1a   : > { %1260 = vmatmul.mubr.msk.bf16.vlgmr.msra.gmra.mrb[0].mxu0 %vm356_vm0, %v318_v13  ;;  %v321_v23 = vpack.c.bf16 %v310_v19, %v309_v18  ;;  %1283 = vmatprep.subr.bf16.mxu1 %v1434_v20  ;;  %v313_v26 = vld [vmem:[%s1626_s29 + $0x60] sm:$0xff]  ;;  %v314_v27 = vld [vmem:[%s1626_s29 + $0x68] sm:$0xff]  ;;  %v322_v28 = vpack.c.bf16 %v312_v25, %v311_v24  ;;  %v315_v30 = vld [vmem:[%s1626_s29 + $0x70] sm:$0xff] }
  0x1b   : > { %1263 = vmatprep.mubr.msk.bf16.mxu0 %vm356_vm0, %v319_v14  ;;  %v323_v29 = vpack.c.bf16 %v314_v27, %v313_v26  ;;  %v316_v31 = vld [vmem:[%s1626_s29 + $0x78] sm:$0xff]  ;;  %1308 = vmatpush3.bf16.msra.mxu0 %v1438_v35 }
  0x1c   : > { %v324_v32 = vpack.c.bf16 %v316_v31, %v315_v30  ;;  %1309 = vmatprep.subr.bf16.mxu0 %v1439_v36  ;;  %v1445_v35 = vld [vmem:[%s1827_s5 + $0x38] sm:$0xff]  }
  0x1d   : > { %1284 = vmatpush3.bf16.msra.mxu1 %v1434_v20 }
  0x1e   : > { %1285 = vmatprep.subr.bf16.mxu1 %v1435_v21 }
  0x1f   : > { %1310 = vmatpush3.bf16.msra.mxu0 %v1439_v36  ;;  %v1172_v36 = vld [vmem:[%s1826_s4] ss:$0 sm:$0xff] }
  0x20   : > { %1311 = vmatprep.subr.bf16.mxu0 %v1440_v37 }
  0x21   : > { %1286 = vmatpush3.bf16.msra.mxu1 %v1435_v21 }
  0x22   : > { %1264 = vmatmul.mubr.msk.bf16.gmra.mrb[4].mxu0 %vm356_vm0, %v320_v22  ;;  %1287 = vmatprep.subr.bf16.mxu1 %v1436_v33 }
  0x23   : > { %1267 = vmatprep.mubr.msk.bf16.mxu0 %vm356_vm0, %v321_v23  ;;  %1312 = vmatpush3.bf16.msra.mxu0 %v1440_v37 }
  0x24   : > { %1313 = vmatprep.subr.bf16.mxu0 %v1441_v38 }
  0x25   : > { %1288 = vmatpush3.bf16.msra.mxu1 %v1436_v33 }
  0x26   : > { %1289 = vmatprep.subr.bf16.mxu1 %v1437_v34 }
  0x27   : > { %1314 = vmatpush3.bf16.msra.mxu0 %v1441_v38 }
  0x28   : > { %1315 = vmatprep.subr.bf16.mxu0 %v1442_v39 }
  0x29   : > { %1290 = vmatpush3.bf16.msra.mxu1 %v1437_v34  ;;  %v1444_v34 = vld [vmem:[%s1827_s5 + $0x30] sm:$0xff]  }
  0x2a   : > { %1268 = vmatmul.mubr.msk.bf16.gmra.mrb[8].mxu0 %vm356_vm0, %v322_v28 }
  0x2b   : > { %1271 = vmatprep.mubr.msk.bf16.mxu0 %vm356_vm0, %v323_v29  ;;  %1316 = vmatpush3.bf16.msra.mxu0 %v1442_v39 }
  0x2c   : > { %1317 = vmatprep.subr.bf16.mxu0 %v1443_v40 }
  0x2f   : > { %1318 = vmatpush3.bf16.msra.mxu0 %v1443_v40 }
  0x30   : > { %1319 = vmatprep.subr.bf16.mxu0 %v1444_v34 }
  0x32   : > { %1272 = vmatmul.mubr.msk.bf16.gmra.mrb[12].mxu0 %vm356_vm0, %v324_v32 }
  0x33   : > { %1320 = vmatpush3.bf16.msra.mxu0 %v1444_v34 }
  0x34   : > { %1321 = vmatprep.subr.bf16.mxu0 %v1445_v35 }
  0x37   : > { %1322 = vmatpush3.bf16.msra.mxu0 %v1445_v35 }
  0xed   : > { %v1261_v42 = vpop.f32.mrb[0].mxu0 }
  0xee   : > { %v424_v43 = vadd.f32 %v1261_v42, %v1160_v41  ;;  %v415_v44 = vpop.f32.mrb[1].mxu0 }
  0xef   : > { %v416_v45 = vadd.f32 %v1160_v41, %v415_v44  ;;  %v1262_v46 = vpop.f32.mrb[2].mxu0 }
  0xf0   : > { %v427_v47 = vadd.f32 %v1262_v46, %v1160_v41  ;;  %v418_v48 = vpop.f32.mrb[3].mxu0  ;;  %v480_v50 = vmax.f32 %v424_v43, 0.0 }
  0xf1   : > { %v419_v49 = vadd.f32 %v1160_v41, %v418_v48  ;;  %v478_v52 = vmax.f32 %v416_v45, 0.0 }
  0xf2   : > { %v481_v51 = vmax.f32 %v427_v47, 0.0 }
  0xf3   : > { %v479_v53 = vmax.f32 %v419_v49, 0.0 }
  0xf4   : > { %v495_v54 = vpack.c.bf16 %v481_v51, %v480_v50 }
  0xf5   : > { %v1265_v55 = vpop.f32.mrb[4].mxu0  ;;  %v494_v56 = vpack.c.bf16 %v479_v53, %v478_v52 }
  0xf6   : > { %v440_v57 = vadd.f32 %v1265_v55, %v1160_v41  ;;  %v431_v58 = vpop.f32.mrb[5].mxu0 }
  0xf7   : > { %v432_v59 = vadd.f32 %v1160_v41, %v431_v58  ;;  %v1266_v60 = vpop.f32.mrb[6].mxu0  ;;  %1291 = vmatprep.mubr.bf16.mxu1 %v494_v56 }
  0xf8   : > { %v443_v61 = vadd.f32 %v1266_v60, %v1160_v41  ;;  %v434_v62 = vpop.f32.mrb[7].mxu0  ;;  %1292 = vmatmul.mubr.bf16.vlgmr.msra.gmra.mrb[0].mxu1 %v495_v54  ;;  %v484_v0 = vmax.f32 %v440_v57, 0.0 }
  0xf9   : > { %v435_v63 = vadd.f32 %v1160_v41, %v434_v62  ;;  %v482_v2 = vmax.f32 %v432_v59, 0.0 }
  0xfa   : > { %v485_v1 = vmax.f32 %v443_v61, 0.0 }
  0xfb   : > { %v483_v3 = vmax.f32 %v435_v63, 0.0 }
  0xfc   : > { %v497_v4 = vpack.c.bf16 %v485_v1, %v484_v0 }
  0xfd   : > { %v496_v5 = vpack.c.bf16 %v483_v3, %v482_v2  ;;  %v1269_v6 = vpop.f32.mrb[8].mxu0 }
  0xfe   : > { %v456_v7 = vadd.f32 %v1269_v6, %v1160_v41  ;;  %v447_v8 = vpop.f32.mrb[9].mxu0 }
  0xff   : > { %v448_v9 = vadd.f32 %v1160_v41, %v447_v8  ;;  %v1270_v10 = vpop.f32.mrb[10].mxu0  ;;  %1295 = vmatprep.mubr.bf16.mxu1 %v496_v5 }
 0x100   : > { %v459_v11 = vadd.f32 %v1270_v10, %v1160_v41  ;;  %v450_v12 = vpop.f32.mrb[11].mxu0  ;;  %1296 = vmatmul.mubr.bf16.gmra.mrb[4].mxu1 %v497_v4  ;;  %v488_v14 = vmax.f32 %v456_v7, 0.0 }
 0x101   : > { %v451_v13 = vadd.f32 %v1160_v41, %v450_v12  ;;  %v486_v16 = vmax.f32 %v448_v9, 0.0 }
 0x102   : > { %v489_v15 = vmax.f32 %v459_v11, 0.0 }
 0x103   : > { %v487_v17 = vmax.f32 %v451_v13, 0.0 }
 0x104   : > { %v499_v18 = vpack.c.bf16 %v489_v15, %v488_v14 }
 0x105   : > { %v498_v19 = vpack.c.bf16 %v487_v17, %v486_v16  ;;  %v1273_v20 = vpop.f32.mrb[12].mxu0 }
 0x106   : > { %v472_v21 = vadd.f32 %v1273_v20, %v1160_v41  ;;  %v463_v22 = vpop.f32.mrb[13].mxu0 }
 0x107   : > { %v464_v23 = vadd.f32 %v1160_v41, %v463_v22  ;;  %v1274_v24 = vpop.f32.mrb[14].mxu0  ;;  %1299 = vmatprep.mubr.bf16.mxu1 %v498_v19 }
 0x108   : > { %v475_v25 = vadd.f32 %v1274_v24, %v1160_v41  ;;  %v466_v26 = vpop.f32.mrb[15].mxu0  ;;  %1300 = vmatmul.mubr.bf16.gmra.mrb[8].mxu1 %v499_v18  ;;  %v492_v28 = vmax.f32 %v472_v21, 0.0 }
 0x109   : > { %v467_v27 = vadd.f32 %v1160_v41, %v466_v26  ;;  %v490_v30 = vmax.f32 %v464_v23, 0.0 }
 0x10a   : > { %v493_v29 = vmax.f32 %v475_v25, 0.0 }
 0x10b   : > { %v491_v31 = vmax.f32 %v467_v27, 0.0 }
 0x10c   : > { %v501_v32 = vpack.c.bf16 %v493_v29, %v492_v28  ;;  %v1181_v29 = vld [vmem:[%s1828_s6] ss:$0 sm:$0xff] }
 0x10d   : > { %v500_v33 = vpack.c.bf16 %v491_v31, %v490_v30 }
 0x10f   : > { %1303 = vmatprep.mubr.bf16.mxu1 %v500_v33 }
 0x110   : > { %1304 = vmatmul.mubr.bf16.gmra.mrb[12].mxu1 %v501_v32 }
 0x1cb   : > { %v1293_v37 = vpop.f32.mrb[0].mxu1 }
 0x1cc   : > { %v616_v38 = vadd.f32 %v1293_v37, %v1172_v36  ;;  %v607_v39 = vpop.f32.mrb[1].mxu1 }
 0x1cd   : > { %v608_v40 = vadd.f32 %v1172_v36, %v607_v39  ;;  %v1294_v41 = vpop.f32.mrb[2].mxu1 }
 0x1ce   : > { %v619_v42 = vadd.f32 %v1294_v41, %v1172_v36  ;;  %v610_v43 = vpop.f32.mrb[3].mxu1  ;;  %v672_v45 = vmax.f32 %v616_v38, 0.0 }
 0x1cf   : > { %v611_v44 = vadd.f32 %v1172_v36, %v610_v43  ;;  %v670_v47 = vmax.f32 %v608_v40, 0.0 }
 0x1d0   : > { %v673_v46 = vmax.f32 %v619_v42, 0.0 }
 0x1d1   : > { %v671_v48 = vmax.f32 %v611_v44, 0.0 }
 0x1d2   : > { %v687_v49 = vpack.c.bf16 %v673_v46, %v672_v45 }
 0x1d3   : > { %v686_v50 = vpack.c.bf16 %v671_v48, %v670_v47  ;;  %v1297_v51 = vpop.f32.mrb[4].mxu1 }
 0x1d4   : > { %v632_v52 = vadd.f32 %v1297_v51, %v1172_v36  ;;  %v623_v53 = vpop.f32.mrb[5].mxu1 }
 0x1d5   : > { %v624_v54 = vadd.f32 %v1172_v36, %v623_v53  ;;  %v1298_v55 = vpop.f32.mrb[6].mxu1  ;;  %1323 = vmatprep.mubr.bf16.mxu0 %v686_v50 }
 0x1d6   : > { %v635_v56 = vadd.f32 %v1298_v55, %v1172_v36  ;;  %v626_v57 = vpop.f32.mrb[7].mxu1  ;;  %1324 = vmatmul.mubr.bf16.vlgmr.msra.gmra.mrb[16].mxu0 %v687_v49  ;;  %v676_v59 = vmax.f32 %v632_v52, 0.0 }
 0x1d7   : > { %v627_v58 = vadd.f32 %v1172_v36, %v626_v57  ;;  %v674_v61 = vmax.f32 %v624_v54, 0.0 }
 0x1d8   : > { %v677_v60 = vmax.f32 %v635_v56, 0.0 }
 0x1d9   : > { %v675_v62 = vmax.f32 %v627_v58, 0.0 }
 0x1da   : > { %v689_v63 = vpack.c.bf16 %v677_v60, %v676_v59 }
 0x1db   : > { %v688_v0 = vpack.c.bf16 %v675_v62, %v674_v61  ;;  %v1301_v1 = vpop.f32.mrb[8].mxu1 }
 0x1dc   : > { %v648_v2 = vadd.f32 %v1301_v1, %v1172_v36  ;;  %v639_v3 = vpop.f32.mrb[9].mxu1 }
 0x1dd   : > { %v640_v4 = vadd.f32 %v1172_v36, %v639_v3  ;;  %v1302_v5 = vpop.f32.mrb[10].mxu1  ;;  %1327 = vmatprep.mubr.bf16.mxu0 %v688_v0 }
 0x1de   : > { %v651_v6 = vadd.f32 %v1302_v5, %v1172_v36  ;;  %v642_v7 = vpop.f32.mrb[11].mxu1  ;;  %1328 = vmatmul.mubr.bf16.gmra.mrb[20].mxu0 %v689_v63  ;;  %v680_v9 = vmax.f32 %v648_v2, 0.0 }
 0x1df   : > { %v643_v8 = vadd.f32 %v1172_v36, %v642_v7  ;;  %v678_v11 = vmax.f32 %v640_v4, 0.0 }
 0x1e0   : > { %v681_v10 = vmax.f32 %v651_v6, 0.0 }
 0x1e1   : > { %v679_v12 = vmax.f32 %v643_v8, 0.0 }
 0x1e2   : > { %v691_v13 = vpack.c.bf16 %v681_v10, %v680_v9 }
 0x1e3   : > { %v690_v14 = vpack.c.bf16 %v679_v12, %v678_v11  ;;  %v1305_v15 = vpop.f32.mrb[12].mxu1 }
 0x1e4   : > { %v664_v16 = vadd.f32 %v1305_v15, %v1172_v36  ;;  %v655_v17 = vpop.f32.mrb[13].mxu1 }
 0x1e5   : > { %v656_v18 = vadd.f32 %v1172_v36, %v655_v17  ;;  %v1306_v19 = vpop.f32.mrb[14].mxu1  ;;  %1331 = vmatprep.mubr.bf16.mxu0 %v690_v14 }
 0x1e6   : > { %v667_v20 = vadd.f32 %v1306_v19, %v1172_v36  ;;  %v658_v21 = vpop.f32.mrb[15].mxu1  ;;  %1332 = vmatmul.mubr.bf16.gmra.mrb[24].mxu0 %v691_v13  ;;  %v684_v23 = vmax.f32 %v664_v16, 0.0 }
 0x1e7   : > { %v659_v22 = vadd.f32 %v1172_v36, %v658_v21  ;;  %v682_v25 = vmax.f32 %v656_v18, 0.0 }
 0x1e8   : > { %v685_v24 = vmax.f32 %v667_v20, 0.0 }
 0x1e9   : > { %v683_v26 = vmax.f32 %v659_v22, 0.0 }
 0x1ea   : > { %v693_v27 = vpack.c.bf16 %v685_v24, %v684_v23 }
 0x1eb   : > { %v692_v28 = vpack.c.bf16 %v683_v26, %v682_v25 }
 0x1ed   : > { %1335 = vmatprep.mubr.bf16.mxu0 %v692_v28 }
 0x1ee   : > { %1336 = vmatmul.mubr.bf16.gmra.mrb[28].mxu0 %v693_v27 }
 0x2a9   : > { %v1325_v30 = vpop.f32.mrb[16].mxu0 }
 0x2aa   : > { %v808_v31 = vadd.f32 %v1325_v30, %v1181_v29  ;;  %v799_v32 = vpop.f32.mrb[17].mxu0 }
 0x2ab   : > { %v800_v33 = vadd.f32 %v1181_v29, %v799_v32  ;;  %v1326_v34 = vpop.f32.mrb[18].mxu0 }
 0x2ac   : > { %864 = vst [vmem:[%s1704_s14 + $0x10] sm:$0xff] %v808_v31  ;;  %v811_v35 = vadd.f32 %v1326_v34, %v1181_v29  ;;  %v802_v36 = vpop.f32.mrb[19].mxu0 }
 0x2ad   : > { %862 = vst [vmem:[%s1704_s14] sm:$0xff] %v800_v33  ;;  %v803_v37 = vadd.f32 %v1181_v29, %v802_v36 }
 0x2ae   : > { %865 = vst [vmem:[%s1704_s14 + $0x18] sm:$0xff] %v811_v35 }
 0x2af   : > { %863 = vst [vmem:[%s1704_s14 + $0x8] sm:$0xff] %v803_v37 }
 0x2b1   : > { %v1329_v38 = vpop.f32.mrb[20].mxu0 }
 0x2b2   : > { %v824_v39 = vadd.f32 %v1329_v38, %v1181_v29  ;;  %v815_v40 = vpop.f32.mrb[21].mxu0 }
 0x2b3   : > { %v816_v41 = vadd.f32 %v1181_v29, %v815_v40  ;;  %v1330_v42 = vpop.f32.mrb[22].mxu0 }
 0x2b4   : > { %868 = vst [vmem:[%s1704_s14 + $0x30] sm:$0xff] %v824_v39  ;;  %v827_v43 = vadd.f32 %v1330_v42, %v1181_v29  ;;  %v818_v44 = vpop.f32.mrb[23].mxu0 }
 0x2b5   : > { %866 = vst [vmem:[%s1704_s14 + $0x20] sm:$0xff] %v816_v41  ;;  %v819_v45 = vadd.f32 %v1181_v29, %v818_v44 }
 0x2b6   : > { %869 = vst [vmem:[%s1704_s14 + $0x38] sm:$0xff] %v827_v43 }
 0x2b7   : > { %867 = vst [vmem:[%s1704_s14 + $0x28] sm:$0xff] %v819_v45 }
 0x2b9   : > { %v1333_v46 = vpop.f32.mrb[24].mxu0 }
 0x2ba   : > { %v840_v47 = vadd.f32 %v1333_v46, %v1181_v29  ;;  %v831_v48 = vpop.f32.mrb[25].mxu0 }
 0x2bb   : > { %v832_v49 = vadd.f32 %v1181_v29, %v831_v48  ;;  %v1334_v50 = vpop.f32.mrb[26].mxu0 }
 0x2bc   : > { %872 = vst [vmem:[%s1704_s14 + $0x50] sm:$0xff] %v840_v47  ;;  %v843_v51 = vadd.f32 %v1334_v50, %v1181_v29  ;;  %v834_v52 = vpop.f32.mrb[27].mxu0 }
 0x2bd   : > { %870 = vst [vmem:[%s1704_s14 + $0x40] sm:$0xff] %v832_v49  ;;  %v835_v53 = vadd.f32 %v1181_v29, %v834_v52 }
 0x2be   : > { %873 = vst [vmem:[%s1704_s14 + $0x58] sm:$0xff] %v843_v51 }
 0x2bf   : > { %871 = vst [vmem:[%s1704_s14 + $0x48] sm:$0xff] %v835_v53 }
 0x2c1   : > { %v1337_v54 = vpop.f32.mrb[28].mxu0  ;;  %884 = sbr.rel (!%p1599_p4) target bundleno = 761 (0x2f9), region = 52 }
 0x2c2   : > { %v856_v55 = vadd.f32 %v1337_v54, %v1181_v29  ;;  %v847_v56 = vpop.f32.mrb[29].mxu0 }
 0x2c3   : > { %v848_v57 = vadd.f32 %v1181_v29, %v847_v56  ;;  %v1338_v58 = vpop.f32.mrb[30].mxu0 }
 0x2c4   : > { %876 = vst [vmem:[%s1704_s14 + $0x70] sm:$0xff] %v856_v55  ;;  %v859_v59 = vadd.f32 %v1338_v58, %v1181_v29  ;;  %v850_v60 = vpop.f32.mrb[31].mxu0 }
 0x2c5   : > { %874 = vst [vmem:[%s1704_s14 + $0x60] sm:$0xff] %v848_v57  ;;  %v851_v61 = vadd.f32 %v1181_v29, %v850_v60 }
 0x2c6   : > { %877 = vst [vmem:[%s1704_s14 + $0x78] sm:$0xff] %v859_v59 }
 0x2c7   : > { %875 = vst [vmem:[%s1704_s14 + $0x68] sm:$0xff] %v851_v61 }
 0x2c8   : > { %s1838_s24 = smov (!%p887_p8, %s886_s24), 16 }
 0x2c9   : > { %s1192_s19 = sshll.u32 %s1838_s24, 7 }
 0x2ca   : > { %p1195_p9 = scmp.eq.s32.totalorder %s1192_s19, 0 }
 0x2cb   : > { %s1735_s20 = sshrl.u32 (!%p1195_p9), %s1838_s24, 4 }
 0x2cc   : > { %895 = sbr.rel (%p1195_p9) target bundleno = 761 (0x2f9), region = 56  ;;  %p1196_p10 = scmp.le.s32.totalorder (!%p1195_p9), %s1735_s20, 0 }
 0x2d3   : > { %1109 = sbr.rel (%p1196_p10) target bundleno = 740 (0x2e4), region = 132  ;;  %s1831_s27 = smov (!%p1196_p10), %s1729_s18 }
 0x2d4   : > { %s1832_s9 = smov (!%p1196_p10), %s1704_s14  ;;  %s1744_s12 = smov (!%p1196_p10), 0  }
 0x2d5   : > { %s1746_s21 = smov (!%p1196_p10), 0  }
 0x2da LB: >> { %v987_v62 = vld [vmem:[%s1508_s9] sm:$0xff]  ;;  %v989_v63 = vld [vmem:[%s1508_s9 + $0x8] sm:$0xff]  ;;  %v991_v0 = vld [vmem:[%s1508_s9 + $0x10] sm:$0xff]  ;;  %s1019_s22 = sadd.s32 1, %s1512_s12  ;;  %s981_s21 = sadd.s32 1, %s1516_s21   ;;  %s1516_s21 = sphi %s1746_s21, %s981_s21   ;;  %s1512_s12 = sphi %s1744_s12, %s1833_s12   ;;  %s1508_s9 = sphi %s1832_s9, %s1024_s9   ;;  %s1504_s27 = sphi %s1831_s27, %s1025_s27  }
 0x2db   : >> { %988 = vst [vmem:[%s1504_s27] sm:$0xff] %v987_v62  ;;  %990 = vst [vmem:[%s1504_s27 + $0x8] sm:$0xff] %v989_v63  ;;  %v993_v1 = vld [vmem:[%s1508_s9 + $0x18] sm:$0xff]  ;;  %v995_v2 = vld [vmem:[%s1508_s9 + $0x20] sm:$0xff]  ;;  %p1020_p11 = scmp.ge.s32.totalorder %s1019_s22, %s1735_s20  ;;  %p980_p12 = scmp.ge.s32.totalorder %s981_s21, %s1735_s20 }
 0x2dc   : >> { %992 = vst [vmem:[%s1504_s27 + $0x10] sm:$0xff] %v991_v0  ;;  %v997_v3 = vld [vmem:[%s1508_s9 + $0x28] sm:$0xff]  ;;  %994 = vst [vmem:[%s1504_s27 + $0x18] sm:$0xff] %v993_v1  ;;  %v999_v4 = vld [vmem:[%s1508_s9 + $0x30] sm:$0xff] }
 0x2dd   : >> { %996 = vst [vmem:[%s1504_s27 + $0x20] sm:$0xff] %v995_v2  ;;  %998 = vst [vmem:[%s1504_s27 + $0x28] sm:$0xff] %v997_v3  ;;  %v1001_v5 = vld [vmem:[%s1508_s9 + $0x38] sm:$0xff]  ;;  %v1003_v6 = vld [vmem:[%s1508_s9 + $0x40] sm:$0xff]  ;;  %s1840_s22 = smov (%p1020_p11, %s1019_s22), 0  ;;  %983 = sbr.rel (!%p980_p12) target bundleno = 730 (0x2da), region = 138 }
 0x2de   : >> { %1000 = vst [vmem:[%s1504_s27 + $0x30] sm:$0xff] %v999_v4  ;;  %1002 = vst [vmem:[%s1504_s27 + $0x38] sm:$0xff] %v1001_v5  ;;  %v1005_v7 = vld [vmem:[%s1508_s9 + $0x48] sm:$0xff]  ;;  %v1007_v8 = vld [vmem:[%s1508_s9 + $0x50] sm:$0xff]  ;;  %s1197_s23 = sshll.u32 %s1840_s22, 7  ;;  %s1833_s12 = smov %s1840_s22 }
 0x2df   : >> { %1004 = vst [vmem:[%s1504_s27 + $0x40] sm:$0xff] %v1003_v6  ;;  %v1009_v9 = vld [vmem:[%s1508_s9 + $0x58] sm:$0xff]  ;;  %1006 = vst [vmem:[%s1504_s27 + $0x48] sm:$0xff] %v1005_v7  ;;  %v1011_v10 = vld [vmem:[%s1508_s9 + $0x60] sm:$0xff] }
 0x2e0   : >> { %1008 = vst [vmem:[%s1504_s27 + $0x50] sm:$0xff] %v1007_v8  ;;  %1010 = vst [vmem:[%s1504_s27 + $0x58] sm:$0xff] %v1009_v9  ;;  %v1013_v11 = vld [vmem:[%s1508_s9 + $0x68] sm:$0xff]  ;;  %v1015_v12 = vld [vmem:[%s1508_s9 + $0x70] sm:$0xff] }
 0x2e1   : >> { %1012 = vst [vmem:[%s1504_s27 + $0x60] sm:$0xff] %v1011_v10  ;;  %1014 = vst [vmem:[%s1504_s27 + $0x68] sm:$0xff] %v1013_v11  ;;  %v1017_v13 = vld [vmem:[%s1508_s9 + $0x78] sm:$0xff]  ;;  %s1024_s9 = scalar_lea.vmem %s1704_s14, %s1197_s23 [#allocation2]  }
 0x2e2   : >> { %1016 = vst [vmem:[%s1504_s27 + $0x70] sm:$0xff] %v1015_v12  ;;  %1018 = vst [vmem:[%s1504_s27 + $0x78] sm:$0xff] %v1017_v13  ;;  %s1025_s27 = scalar_lea.vmem %s1729_s18, %s1197_s23  }
 0x2e4 PF: > { %s1804_s26 = sand.u32 15, %s1838_s24   ;;  %s1208_s29 = sshll.u32 %s1735_s20, 7 }
 0x2e5   : > { %s1030_s30 = scalar_lea.vmem %s1704_s14, %s1208_s29 [#allocation2]   ;;  %s1032_s10 = scalar_lea.vmem %s1729_s18, %s1208_s29  }
 0x2e6   : > { %p1202_p13 = scmp.le.s32.totalorder %s1804_s26, 0 }
 0x2e7   : > { %s1518_s11 = smov (!%p1202_p13), %s1032_s10   ;;  %s1522_s13 = smov (!%p1202_p13), %s1030_s30  }
 0x2e8   : > { %1123 = sbr.rel (%p1202_p13) target bundleno = 761 (0x2f9), region = 143  ;;  %s1526_s15 = smov (!%p1202_p13), 0  }
 0x2e9   : > { %s1530_s16 = smov (!%p1202_p13), 0  }
 0x2ef LB: >> { %v1042_v14 = vld [vmem:[%s1524_s13] sm:$0xff]  ;;  %s1044_s24 = sadd.s32 1, %s1528_s15  ;;  %s1036_s16 = sadd.s32 1, %s1532_s16   ;;  %s1532_s16 = sphi %s1530_s16, %s1036_s16   ;;  %s1528_s15 = sphi %s1526_s15, %s1527_s15   ;;  %s1524_s13 = sphi %s1522_s13, %s1049_s13   ;;  %s1520_s11 = sphi %s1518_s11, %s1050_s11  }
 0x2f0   : >> { %1043 = vst [vmem:[%s1520_s11] sm:$0xff] %v1042_v14  ;;  %p1045_p0 = scmp.ge.s32.totalorder %s1044_s24, %s1804_s26  ;;  %p1035_p1 = scmp.ge.s32.totalorder %s1036_s16, %s1804_s26 }
 0x2f2   : >> { %s1842_s24 = smov (%p1045_p0, %s1044_s24), 0  ;;  %1038 = sbr.rel (!%p1035_p1) target bundleno = 751 (0x2ef), region = 149 }
 0x2f3   : >> { %s1203_s14 = sshll.u32 %s1842_s24, 3  ;;  %s1527_s15 = smov %s1842_s24  }
 0x2f4   : >> { %s1049_s13 = scalar_lea.vmem %s1030_s30, %s1203_s14 [#allocation2]   ;;  %s1050_s11 = scalar_lea.vmem %s1032_s10, %s1203_s14  }
 0x2f9 PF: > { %p14_p2 = scmp.ge.s32.totalorder %s1589_s28, 4   ;;  %s1834_s24 = smov %s1496_s25 }
 0x2fa   : > { %s1835_s25 = smov %s1597_s8  ;;  %s1836_s26 = smov %s1589_s28 }
 0x2fb   :  { %16 = sbr.rel (!%p14_p2) target bundleno = 2 (0x2), region = 160 }

// kernel: advanced_feed_forward.1
= control target key start
LH: loop header
LB: loop body
LE: loop exit
PB: predicated region body
PF: predicated region fallthrough
CT: control target
= control target key end

     0   :  { %s1574_s24 = smov 0   ;;  %s1576_s25 = smov 0   ;;  %s1822_s0 = inlined_call_operand.vmem [shape: f32[200,48], index: 0, kind: input, shape index: {}]   ;;  %s1823_s1 = inlined_call_operand.vmem [shape: bf16[48,128], index: 1, kind: input, shape index: {}]   ;;  %s1824_s2 = inlined_call_operand.vmem [shape: f32[1,128], index: 2, kind: input, shape index: {}]   ;;  %s1825_s3 = inlined_call_operand.vmem [shape: bf16[128,128], index: 3, kind: input, shape index: {}]   ;;  %s1826_s4 = inlined_call_operand.vmem [shape: f32[1,128], index: 4, kind: input, shape index: {}]   ;;  %s1827_s5 = inlined_call_operand.vmem [shape: bf16[128,128], index: 5, kind: input, shape index: {}]   ;;  %s1828_s6 = inlined_call_operand.vmem [shape: f32[1,128], index: 6, kind: input, shape index: {}]   ;;  %s1829_s7 = inlined_call_operand.vmem [shape: f32[200,128], index: 7, kind: output, shape index: {}]  }
   0x1   :  { %s1578_s26 = smov 0  }
   0x2 LB: > { %s1587_s27 = sadd.s32 4294967295, %s1500_s26   ;;  %s1589_s28 = sadd.s32 1, %s1500_s26   ;;  %s1500_s26 = sphi %s1578_s26, %s1836_s26   ;;  %s1496_s25 = sphi %s1576_s25, %s1835_s25   ;;  %s1492_s24 = sphi %s1574_s24, %s1834_s24  }
   0x3   : > { %s173_s29 = ssub.s32 %s1500_s26, %s1589_s28  ;;  %s176_s30 = sadd.s32 1, %s1496_s25 }
   0x4   : > { %p174_p0 = scmp.eq.s32.totalorder %s173_s29, 0  ;;  %p186_p1 = scmp.ne.s32.totalorder %s1496_s25, %s1492_s24 }
   0x5   : > { %p187_p2 = scmp.eq.s32.totalorder %s1587_s27, 1  ;;  %p1156_p3 = scmp.ge.s32.totalorder %s1500_s26, 1 }
   0x6   : > { %s1597_s8 = scalar_select %p174_p0, %s1496_s25, %s176_s30  }
   0x7   : > { %p1599_p4 = por %p187_p2, %p186_p1  ;;  %p246_p5 = scmp.lt.s32.totalorder %s1500_s26, 3 }
   0x9   : > { %p247_p6 = pnand %p1156_p3, %p246_p5 }
   0xa   : > { %v1427_v0 = vld [vmem:[%s1823_s1] sm:$0xff] (!%p247_p6)   ;;  %s1607_s12 = sshll.u32 (!%p247_p6), %s1587_s27, 4  ;;  %v1428_v1 = vld [vmem:[%s1823_s1 + $0x8] sm:$0xff] (!%p247_p6)   ;;  %v1429_v2 = vld [vmem:[%s1823_s1 + $0x10] sm:$0xff] (!%p247_p6)   ;;  %vm356_vm0 = vcmask (!%p247_p6), 392192   ;;  %s278_s30 = sand.u32 (!%p247_p6), 1, %s1492_s24  }
   0xb   : > { %250 = sbr.rel (%p247_p6) target bundleno = 761 (0x2f9), region = 48  ;;  %p286_p7 = scmp.lt.s32.totalorder (!%p247_p6), %s1607_s12, 24  ;;  %1253 = vmatprep.subr.bf16.mxu0 (!%p247_p6), %v1427_v0  ;;  %v1430_v3 = vld [vmem:[%s1825_s3] sm:$0xff] (!%p247_p6)   ;;  %v1431_v4 = vld [vmem:[%s1825_s3 + $0x8] sm:$0xff] (!%p247_p6)   ;;  %v1432_v5 = vld [vmem:[%s1825_s3 + $0x10] sm:$0xff] (!%p247_p6)  }
   0xc   : > { %1254 = vmatpush3.bf16.msra.mxu0 (!%p247_p6), %v1427_v0  ;;  %1275 = vmatprep.subr.bf16.mxu1 (!%p247_p6), %v1430_v3  ;;  %v1433_v15 = vld [vmem:[%s1825_s3 + $0x18] sm:$0xff] (!%p247_p6)   ;;  %v1434_v20 = vld [vmem:[%s1825_s3 + $0x20] sm:$0xff] (!%p247_p6)   ;;  %v1435_v21 = vld [vmem:[%s1825_s3 + $0x28] sm:$0xff] (!%p247_p6)   ;;  %s1157_s10 = sshll.u32 (!%p247_p6), %s278_s30, 7 }
   0xd   : > { %1255 = vmatprep.subr.bf16.mxu0 (!%p247_p6), %v1428_v1  ;;  %1276 = vmatpush3.bf16.msra.mxu1 (!%p247_p6), %v1430_v3  ;;  %v1436_v33 = vld [vmem:[%s1825_s3 + $0x30] sm:$0xff] (!%p247_p6)   ;;  %v1437_v34 = vld [vmem:[%s1825_s3 + $0x38] sm:$0xff] (!%p247_p6)   ;;  %v1438_v35 = vld [vmem:[%s1827_s5] sm:$0xff] (!%p247_p6)   ;;  %s1704_s14 = scalar_lea.vmem (!%p247_p6), [#allocation2], %s1157_s10  }
   0xe   : > { %1277 = vmatprep.subr.bf16.mxu1 (!%p247_p6), %v1431_v4  ;;  %v1439_v36 = vld [vmem:[%s1827_s5 + $0x8] sm:$0xff] (!%p247_p6)   ;;  %v1440_v37 = vld [vmem:[%s1827_s5 + $0x10] sm:$0xff] (!%p247_p6)   ;;  %v1441_v38 = vld [vmem:[%s1827_s5 + $0x18] sm:$0xff] (!%p247_p6)  }
   0xf   : > { %v1442_v39 = vld [vmem:[%s1827_s5 + $0x20] sm:$0xff] (!%p247_p6)   ;;  %v1443_v40 = vld [vmem:[%s1827_s5 + $0x28] sm:$0xff] (!%p247_p6)  }
  0x10   : > { %1256 = vmatpush3.bf16.msra.mxu0 (!%p247_p6), %v1428_v1  ;;  %v1160_v41 = vld [vmem:[%s1824_s2] ss:$0 sm:$0xff] (!%p247_p6) }
  0x11   : > { %1257 = vmatprep.subr.bf16.mxu0 (!%p247_p6), %v1429_v2  ;;  %1278 = vmatpush3.bf16.msra.mxu1 (!%p247_p6), %v1431_v4 }
  0x12   : > { %s287_s17 = scalar_select %p286_p7, %s1607_s12, 24  ;;  %1279 = vmatprep.subr.bf16.mxu1 %v1432_v5 }
  0x13   : > { %s886_s24 = ssub.s32 (%p1599_p4), 25, %s1607_s12  ;;  %s1207_s15 = sshll.u32 (%p1599_p4), %s1587_s27, 7 }
  0x14   : > { %s1159_s22 = sshll.u32 %s287_s17, 3  ;;  %1258 = vmatpush3.bf16.msra.mxu0 %v1429_v2  ;;  %p887_p8 = scmp.lt.s32.totalorder (%p1599_p4), %s886_s24, 16 }
  0x15   : > { %s1626_s29 = scalar_lea.vmem %s1822_s0, %s1159_s22  ;;  %1280 = vmatpush3.bf16.msra.mxu1 %v1432_v5  ;;  %1307 = vmatprep.subr.bf16.mxu0 %v1438_v35  ;;  %s1729_s18 = scalar_lea.vmem (%p1599_p4), %s1829_s7, %s1207_s15  }
  0x16   : > { %v301_v6 = vld [vmem:[%s1626_s29] sm:$0xff]  ;;  %v302_v7 = vld [vmem:[%s1626_s29 + $0x8] sm:$0xff]  ;;  %v303_v8 = vld [vmem:[%s1626_s29 + $0x10] sm:$0xff]  ;;  %1281 = vmatprep.subr.bf16.mxu1 %v1433_v15 }
  0x17   : > { %v317_v9 = vpack.c.bf16 %v302_v7, %v301_v6  ;;  %v304_v10 = vld [vmem:[%s1626_s29 + $0x18] sm:$0xff]  ;;  %v305_v11 = vld [vmem:[%s1626_s29 + $0x20] sm:$0xff]  ;;  %v306_v12 = vld [vmem:[%s1626_s29 + $0x28] sm:$0xff] }
  0x18   : > { %v318_v13 = vpack.c.bf16 %v304_v10, %v303_v8  ;;  %v319_v14 = vpack.c.bf16 %v306_v12, %v305_v11  ;;  %v307_v16 = vld [vmem:[%s1626_s29 + $0x30] sm:$0xff]  ;;  %v308_v17 = vld [vmem:[%s1626_s29 + $0x38] sm:$0xff]  ;;  %v309_v18 = vld [vmem:[%s1626_s29 + $0x40] sm:$0xff] }
  0x19   : > { %1259 = vmatprep.mubr.msk.bf16.mxu0 %vm356_vm0, %v317_v9  ;;  %v310_v19 = vld [vmem:[%s1626_s29 + $0x48] sm:$0xff]  ;;  %v320_v22 = vpack.c.bf16 %v308_v17, %v307_v16  ;;  %1282 = vmatpush3.bf16.msra.mxu1 %v1433_v15  ;;  %v311_v24 = vld [vmem:[%s1626_s29 + $0x50] sm:$0xff]  ;;  %v312_v25 = vld [vmem:[%s1626_s29 + $0x58] sm:$0xff] }
  0x1a   : > { %1260 = vmatmul.mubr.msk.bf16.vlgmr.msra.gmra.mrb[0].mxu0 %vm356_vm0, %v318_v13  ;;  %v321_v23 = vpack.c.bf16 %v310_v19, %v309_v18  ;;  %1283 = vmatprep.subr.bf16.mxu1 %v1434_v20  ;;  %v313_v26 = vld [vmem:[%s1626_s29 + $0x60] sm:$0xff]  ;;  %v314_v27 = vld [vmem:[%s1626_s29 + $0x68] sm:$0xff]  ;;  %v322_v28 = vpack.c.bf16 %v312_v25, %v311_v24  ;;  %v315_v30 = vld [vmem:[%s1626_s29 + $0x70] sm:$0xff] }
  0x1b   : > { %1263 = vmatprep.mubr.msk.bf16.mxu0 %vm356_vm0, %v319_v14  ;;  %v323_v29 = vpack.c.bf16 %v314_v27, %v313_v26  ;;  %v316_v31 = vld [vmem:[%s1626_s29 + $0x78] sm:$0xff]  ;;  %1308 = vmatpush3.bf16.msra.mxu0 %v1438_v35 }
  0x1c   : > { %v324_v32 = vpack.c.bf16 %v316_v31, %v315_v30  ;;  %1309 = vmatprep.subr.bf16.mxu0 %v1439_v36  ;;  %v1445_v35 = vld [vmem:[%s1827_s5 + $0x38] sm:$0xff]  }
  0x1d   : > { %1284 = vmatpush3.bf16.msra.mxu1 %v1434_v20 }
  0x1e   : > { %1285 = vmatprep.subr.bf16.mxu1 %v1435_v21 }
  0x1f   : > { %1310 = vmatpush3.bf16.msra.mxu0 %v1439_v36  ;;  %v1172_v36 = vld [vmem:[%s1826_s4] ss:$0 sm:$0xff] }
  0x20   : > { %1311 = vmatprep.subr.bf16.mxu0 %v1440_v37 }
  0x21   : > { %1286 = vmatpush3.bf16.msra.mxu1 %v1435_v21 }
  0x22   : > { %1264 = vmatmul.mubr.msk.bf16.gmra.mrb[4].mxu0 %vm356_vm0, %v320_v22  ;;  %1287 = vmatprep.subr.bf16.mxu1 %v1436_v33 }
  0x23   : > { %1267 = vmatprep.mubr.msk.bf16.mxu0 %vm356_vm0, %v321_v23  ;;  %1312 = vmatpush3.bf16.msra.mxu0 %v1440_v37 }
  0x24   : > { %1313 = vmatprep.subr.bf16.mxu0 %v1441_v38 }
  0x25   : > { %1288 = vmatpush3.bf16.msra.mxu1 %v1436_v33 }
  0x26   : > { %1289 = vmatprep.subr.bf16.mxu1 %v1437_v34 }
  0x27   : > { %1314 = vmatpush3.bf16.msra.mxu0 %v1441_v38 }
  0x28   : > { %1315 = vmatprep.subr.bf16.mxu0 %v1442_v39 }
  0x29   : > { %1290 = vmatpush3.bf16.msra.mxu1 %v1437_v34  ;;  %v1444_v34 = vld [vmem:[%s1827_s5 + $0x30] sm:$0xff]  }
  0x2a   : > { %1268 = vmatmul.mubr.msk.bf16.gmra.mrb[8].mxu0 %vm356_vm0, %v322_v28 }
  0x2b   : > { %1271 = vmatprep.mubr.msk.bf16.mxu0 %vm356_vm0, %v323_v29  ;;  %1316 = vmatpush3.bf16.msra.mxu0 %v1442_v39 }
  0x2c   : > { %1317 = vmatprep.subr.bf16.mxu0 %v1443_v40 }
  0x2f   : > { %1318 = vmatpush3.bf16.msra.mxu0 %v1443_v40 }
  0x30   : > { %1319 = vmatprep.subr.bf16.mxu0 %v1444_v34 }
  0x32   : > { %1272 = vmatmul.mubr.msk.bf16.gmra.mrb[12].mxu0 %vm356_vm0, %v324_v32 }
  0x33   : > { %1320 = vmatpush3.bf16.msra.mxu0 %v1444_v34 }
  0x34   : > { %1321 = vmatprep.subr.bf16.mxu0 %v1445_v35 }
  0x37   : > { %1322 = vmatpush3.bf16.msra.mxu0 %v1445_v35 }
  0xed   : > { %v1261_v42 = vpop.f32.mrb[0].mxu0 }
  0xee   : > { %v424_v43 = vadd.f32 %v1261_v42, %v1160_v41  ;;  %v415_v44 = vpop.f32.mrb[1].mxu0 }
  0xef   : > { %v416_v45 = vadd.f32 %v1160_v41, %v415_v44  ;;  %v1262_v46 = vpop.f32.mrb[2].mxu0 }
  0xf0   : > { %v427_v47 = vadd.f32 %v1262_v46, %v1160_v41  ;;  %v418_v48 = vpop.f32.mrb[3].mxu0  ;;  %v480_v50 = vmax.f32 %v424_v43, 0.0 }
  0xf1   : > { %v419_v49 = vadd.f32 %v1160_v41, %v418_v48  ;;  %v478_v52 = vmax.f32 %v416_v45, 0.0 }
  0xf2   : > { %v481_v51 = vmax.f32 %v427_v47, 0.0 }
  0xf3   : > { %v479_v53 = vmax.f32 %v419_v49, 0.0 }
  0xf4   : > { %v495_v54 = vpack.c.bf16 %v481_v51, %v480_v50 }
  0xf5   : > { %v1265_v55 = vpop.f32.mrb[4].mxu0  ;;  %v494_v56 = vpack.c.bf16 %v479_v53, %v478_v52 }
  0xf6   : > { %v440_v57 = vadd.f32 %v1265_v55, %v1160_v41  ;;  %v431_v58 = vpop.f32.mrb[5].mxu0 }
  0xf7   : > { %v432_v59 = vadd.f32 %v1160_v41, %v431_v58  ;;  %v1266_v60 = vpop.f32.mrb[6].mxu0  ;;  %1291 = vmatprep.mubr.bf16.mxu1 %v494_v56 }
  0xf8   : > { %v443_v61 = vadd.f32 %v1266_v60, %v1160_v41  ;;  %v434_v62 = vpop.f32.mrb[7].mxu0  ;;  %1292 = vmatmul.mubr.bf16.vlgmr.msra.gmra.mrb[0].mxu1 %v495_v54  ;;  %v484_v0 = vmax.f32 %v440_v57, 0.0 }
  0xf9   : > { %v435_v63 = vadd.f32 %v1160_v41, %v434_v62  ;;  %v482_v2 = vmax.f32 %v432_v59, 0.0 }
  0xfa   : > { %v485_v1 = vmax.f32 %v443_v61, 0.0 }
  0xfb   : > { %v483_v3 = vmax.f32 %v435_v63, 0.0 }
  0xfc   : > { %v497_v4 = vpack.c.bf16 %v485_v1, %v484_v0 }
  0xfd   : > { %v496_v5 = vpack.c.bf16 %v483_v3, %v482_v2  ;;  %v1269_v6 = vpop.f32.mrb[8].mxu0 }
  0xfe   : > { %v456_v7 = vadd.f32 %v1269_v6, %v1160_v41  ;;  %v447_v8 = vpop.f32.mrb[9].mxu0 }
  0xff   : > { %v448_v9 = vadd.f32 %v1160_v41, %v447_v8  ;;  %v1270_v10 = vpop.f32.mrb[10].mxu0  ;;  %1295 = vmatprep.mubr.bf16.mxu1 %v496_v5 }
 0x100   : > { %v459_v11 = vadd.f32 %v1270_v10, %v1160_v41  ;;  %v450_v12 = vpop.f32.mrb[11].mxu0  ;;  %1296 = vmatmul.mubr.bf16.gmra.mrb[4].mxu1 %v497_v4  ;;  %v488_v14 = vmax.f32 %v456_v7, 0.0 }
 0x101   : > { %v451_v13 = vadd.f32 %v1160_v41, %v450_v12  ;;  %v486_v16 = vmax.f32 %v448_v9, 0.0 }
 0x102   : > { %v489_v15 = vmax.f32 %v459_v11, 0.0 }
 0x103   : > { %v487_v17 = vmax.f32 %v451_v13, 0.0 }
 0x104   : > { %v499_v18 = vpack.c.bf16 %v489_v15, %v488_v14 }
 0x105   : > { %v498_v19 = vpack.c.bf16 %v487_v17, %v486_v16  ;;  %v1273_v20 = vpop.f32.mrb[12].mxu0 }
 0x106   : > { %v472_v21 = vadd.f32 %v1273_v20, %v1160_v41  ;;  %v463_v22 = vpop.f32.mrb[13].mxu0 }
 0x107   : > { %v464_v23 = vadd.f32 %v1160_v41, %v463_v22  ;;  %v1274_v24 = vpop.f32.mrb[14].mxu0  ;;  %1299 = vmatprep.mubr.bf16.mxu1 %v498_v19 }
 0x108   : > { %v475_v25 = vadd.f32 %v1274_v24, %v1160_v41  ;;  %v466_v26 = vpop.f32.mrb[15].mxu0  ;;  %1300 = vmatmul.mubr.bf16.gmra.mrb[8].mxu1 %v499_v18  ;;  %v492_v28 = vmax.f32 %v472_v21, 0.0 }
 0x109   : > { %v467_v27 = vadd.f32 %v1160_v41, %v466_v26  ;;  %v490_v30 = vmax.f32 %v464_v23, 0.0 }
 0x10a   : > { %v493_v29 = vmax.f32 %v475_v25, 0.0 }
 0x10b   : > { %v491_v31 = vmax.f32 %v467_v27, 0.0 }
 0x10c   : > { %v501_v32 = vpack.c.bf16 %v493_v29, %v492_v28  ;;  %v1181_v29 = vld [vmem:[%s1828_s6] ss:$0 sm:$0xff] }
 0x10d   : > { %v500_v33 = vpack.c.bf16 %v491_v31, %v490_v30 }
 0x10f   : > { %1303 = vmatprep.mubr.bf16.mxu1 %v500_v33 }
 0x110   : > { %1304 = vmatmul.mubr.bf16.gmra.mrb[12].mxu1 %v501_v32 }
 0x1cb   : > { %v1293_v37 = vpop.f32.mrb[0].mxu1 }
 0x1cc   : > { %v616_v38 = vadd.f32 %v1293_v37, %v1172_v36  ;;  %v607_v39 = vpop.f32.mrb[1].mxu1 }
 0x1cd   : > { %v608_v40 = vadd.f32 %v1172_v36, %v607_v39  ;;  %v1294_v41 = vpop.f32.mrb[2].mxu1 }
 0x1ce   : > { %v619_v42 = vadd.f32 %v1294_v41, %v1172_v36  ;;  %v610_v43 = vpop.f32.mrb[3].mxu1  ;;  %v672_v45 = vmax.f32 %v616_v38, 0.0 }
 0x1cf   : > { %v611_v44 = vadd.f32 %v1172_v36, %v610_v43  ;;  %v670_v47 = vmax.f32 %v608_v40, 0.0 }
 0x1d0   : > { %v673_v46 = vmax.f32 %v619_v42, 0.0 }
 0x1d1   : > { %v671_v48 = vmax.f32 %v611_v44, 0.0 }
 0x1d2   : > { %v687_v49 = vpack.c.bf16 %v673_v46, %v672_v45 }
 0x1d3   : > { %v686_v50 = vpack.c.bf16 %v671_v48, %v670_v47  ;;  %v1297_v51 = vpop.f32.mrb[4].mxu1 }
 0x1d4   : > { %v632_v52 = vadd.f32 %v1297_v51, %v1172_v36  ;;  %v623_v53 = vpop.f32.mrb[5].mxu1 }
 0x1d5   : > { %v624_v54 = vadd.f32 %v1172_v36, %v623_v53  ;;  %v1298_v55 = vpop.f32.mrb[6].mxu1  ;;  %1323 = vmatprep.mubr.bf16.mxu0 %v686_v50 }
 0x1d6   : > { %v635_v56 = vadd.f32 %v1298_v55, %v1172_v36  ;;  %v626_v57 = vpop.f32.mrb[7].mxu1  ;;  %1324 = vmatmul.mubr.bf16.vlgmr.msra.gmra.mrb[16].mxu0 %v687_v49  ;;  %v676_v59 = vmax.f32 %v632_v52, 0.0 }
 0x1d7   : > { %v627_v58 = vadd.f32 %v1172_v36, %v626_v57  ;;  %v674_v61 = vmax.f32 %v624_v54, 0.0 }
 0x1d8   : > { %v677_v60 = vmax.f32 %v635_v56, 0.0 }
 0x1d9   : > { %v675_v62 = vmax.f32 %v627_v58, 0.0 }
 0x1da   : > { %v689_v63 = vpack.c.bf16 %v677_v60, %v676_v59 }
 0x1db   : > { %v688_v0 = vpack.c.bf16 %v675_v62, %v674_v61  ;;  %v1301_v1 = vpop.f32.mrb[8].mxu1 }
 0x1dc   : > { %v648_v2 = vadd.f32 %v1301_v1, %v1172_v36  ;;  %v639_v3 = vpop.f32.mrb[9].mxu1 }
 0x1dd   : > { %v640_v4 = vadd.f32 %v1172_v36, %v639_v3  ;;  %v1302_v5 = vpop.f32.mrb[10].mxu1  ;;  %1327 = vmatprep.mubr.bf16.mxu0 %v688_v0 }
 0x1de   : > { %v651_v6 = vadd.f32 %v1302_v5, %v1172_v36  ;;  %v642_v7 = vpop.f32.mrb[11].mxu1  ;;  %1328 = vmatmul.mubr.bf16.gmra.mrb[20].mxu0 %v689_v63  ;;  %v680_v9 = vmax.f32 %v648_v2, 0.0 }
 0x1df   : > { %v643_v8 = vadd.f32 %v1172_v36, %v642_v7  ;;  %v678_v11 = vmax.f32 %v640_v4, 0.0 }
 0x1e0   : > { %v681_v10 = vmax.f32 %v651_v6, 0.0 }
 0x1e1   : > { %v679_v12 = vmax.f32 %v643_v8, 0.0 }
 0x1e2   : > { %v691_v13 = vpack.c.bf16 %v681_v10, %v680_v9 }
 0x1e3   : > { %v690_v14 = vpack.c.bf16 %v679_v12, %v678_v11  ;;  %v1305_v15 = vpop.f32.mrb[12].mxu1 }
 0x1e4   : > { %v664_v16 = vadd.f32 %v1305_v15, %v1172_v36  ;;  %v655_v17 = vpop.f32.mrb[13].mxu1 }
 0x1e5   : > { %v656_v18 = vadd.f32 %v1172_v36, %v655_v17  ;;  %v1306_v19 = vpop.f32.mrb[14].mxu1  ;;  %1331 = vmatprep.mubr.bf16.mxu0 %v690_v14 }
 0x1e6   : > { %v667_v20 = vadd.f32 %v1306_v19, %v1172_v36  ;;  %v658_v21 = vpop.f32.mrb[15].mxu1  ;;  %1332 = vmatmul.mubr.bf16.gmra.mrb[24].mxu0 %v691_v13  ;;  %v684_v23 = vmax.f32 %v664_v16, 0.0 }
 0x1e7   : > { %v659_v22 = vadd.f32 %v1172_v36, %v658_v21  ;;  %v682_v25 = vmax.f32 %v656_v18, 0.0 }
 0x1e8   : > { %v685_v24 = vmax.f32 %v667_v20, 0.0 }
 0x1e9   : > { %v683_v26 = vmax.f32 %v659_v22, 0.0 }
 0x1ea   : > { %v693_v27 = vpack.c.bf16 %v685_v24, %v684_v23 }
 0x1eb   : > { %v692_v28 = vpack.c.bf16 %v683_v26, %v682_v25 }
 0x1ed   : > { %1335 = vmatprep.mubr.bf16.mxu0 %v692_v28 }
 0x1ee   : > { %1336 = vmatmul.mubr.bf16.gmra.mrb[28].mxu0 %v693_v27 }
 0x2a9   : > { %v1325_v30 = vpop.f32.mrb[16].mxu0 }
 0x2aa   : > { %v808_v31 = vadd.f32 %v1325_v30, %v1181_v29  ;;  %v799_v32 = vpop.f32.mrb[17].mxu0 }
 0x2ab   : > { %v800_v33 = vadd.f32 %v1181_v29, %v799_v32  ;;  %v1326_v34 = vpop.f32.mrb[18].mxu0 }
 0x2ac   : > { %864 = vst [vmem:[%s1704_s14 + $0x10] sm:$0xff] %v808_v31  ;;  %v811_v35 = vadd.f32 %v1326_v34, %v1181_v29  ;;  %v802_v36 = vpop.f32.mrb[19].mxu0 }
 0x2ad   : > { %862 = vst [vmem:[%s1704_s14] sm:$0xff] %v800_v33  ;;  %v803_v37 = vadd.f32 %v1181_v29, %v802_v36 }
 0x2ae   : > { %865 = vst [vmem:[%s1704_s14 + $0x18] sm:$0xff] %v811_v35 }
 0x2af   : > { %863 = vst [vmem:[%s1704_s14 + $0x8] sm:$0xff] %v803_v37 }
 0x2b1   : > { %v1329_v38 = vpop.f32.mrb[20].mxu0 }
 0x2b2   : > { %v824_v39 = vadd.f32 %v1329_v38, %v1181_v29  ;;  %v815_v40 = vpop.f32.mrb[21].mxu0 }
 0x2b3   : > { %v816_v41 = vadd.f32 %v1181_v29, %v815_v40  ;;  %v1330_v42 = vpop.f32.mrb[22].mxu0 }
 0x2b4   : > { %868 = vst [vmem:[%s1704_s14 + $0x30] sm:$0xff] %v824_v39  ;;  %v827_v43 = vadd.f32 %v1330_v42, %v1181_v29  ;;  %v818_v44 = vpop.f32.mrb[23].mxu0 }
 0x2b5   : > { %866 = vst [vmem:[%s1704_s14 + $0x20] sm:$0xff] %v816_v41  ;;  %v819_v45 = vadd.f32 %v1181_v29, %v818_v44 }
 0x2b6   : > { %869 = vst [vmem:[%s1704_s14 + $0x38] sm:$0xff] %v827_v43 }
 0x2b7   : > { %867 = vst [vmem:[%s1704_s14 + $0x28] sm:$0xff] %v819_v45 }
 0x2b9   : > { %v1333_v46 = vpop.f32.mrb[24].mxu0 }
 0x2ba   : > { %v840_v47 = vadd.f32 %v1333_v46, %v1181_v29  ;;  %v831_v48 = vpop.f32.mrb[25].mxu0 }
 0x2bb   : > { %v832_v49 = vadd.f32 %v1181_v29, %v831_v48  ;;  %v1334_v50 = vpop.f32.mrb[26].mxu0 }
 0x2bc   : > { %872 = vst [vmem:[%s1704_s14 + $0x50] sm:$0xff] %v840_v47  ;;  %v843_v51 = vadd.f32 %v1334_v50, %v1181_v29  ;;  %v834_v52 = vpop.f32.mrb[27].mxu0 }
 0x2bd   : > { %870 = vst [vmem:[%s1704_s14 + $0x40] sm:$0xff] %v832_v49  ;;  %v835_v53 = vadd.f32 %v1181_v29, %v834_v52 }
 0x2be   : > { %873 = vst [vmem:[%s1704_s14 + $0x58] sm:$0xff] %v843_v51 }
 0x2bf   : > { %871 = vst [vmem:[%s1704_s14 + $0x48] sm:$0xff] %v835_v53 }
 0x2c1   : > { %v1337_v54 = vpop.f32.mrb[28].mxu0  ;;  %884 = sbr.rel (!%p1599_p4) target bundleno = 761 (0x2f9), region = 52 }
 0x2c2   : > { %v856_v55 = vadd.f32 %v1337_v54, %v1181_v29  ;;  %v847_v56 = vpop.f32.mrb[29].mxu0 }
 0x2c3   : > { %v848_v57 = vadd.f32 %v1181_v29, %v847_v56  ;;  %v1338_v58 = vpop.f32.mrb[30].mxu0 }
 0x2c4   : > { %876 = vst [vmem:[%s1704_s14 + $0x70] sm:$0xff] %v856_v55  ;;  %v859_v59 = vadd.f32 %v1338_v58, %v1181_v29  ;;  %v850_v60 = vpop.f32.mrb[31].mxu0 }
 0x2c5   : > { %874 = vst [vmem:[%s1704_s14 + $0x60] sm:$0xff] %v848_v57  ;;  %v851_v61 = vadd.f32 %v1181_v29, %v850_v60 }
 0x2c6   : > { %877 = vst [vmem:[%s1704_s14 + $0x78] sm:$0xff] %v859_v59 }
 0x2c7   : > { %875 = vst [vmem:[%s1704_s14 + $0x68] sm:$0xff] %v851_v61 }
 0x2c8   : > { %s1838_s24 = smov (!%p887_p8, %s886_s24), 16 }
 0x2c9   : > { %s1192_s19 = sshll.u32 %s1838_s24, 7 }
 0x2ca   : > { %p1195_p9 = scmp.eq.s32.totalorder %s1192_s19, 0 }
 0x2cb   : > { %s1735_s20 = sshrl.u32 (!%p1195_p9), %s1838_s24, 4 }
 0x2cc   : > { %895 = sbr.rel (%p1195_p9) target bundleno = 761 (0x2f9), region = 56  ;;  %p1196_p10 = scmp.le.s32.totalorder (!%p1195_p9), %s1735_s20, 0 }
 0x2d3   : > { %1109 = sbr.rel (%p1196_p10) target bundleno = 740 (0x2e4), region = 132  ;;  %s1831_s27 = smov (!%p1196_p10), %s1729_s18 }
 0x2d4   : > { %s1832_s9 = smov (!%p1196_p10), %s1704_s14  ;;  %s1744_s12 = smov (!%p1196_p10), 0  }
 0x2d5   : > { %s1746_s21 = smov (!%p1196_p10), 0  }
 0x2da LB: >> { %v987_v62 = vld [vmem:[%s1508_s9] sm:$0xff]  ;;  %v989_v63 = vld [vmem:[%s1508_s9 + $0x8] sm:$0xff]  ;;  %v991_v0 = vld [vmem:[%s1508_s9 + $0x10] sm:$0xff]  ;;  %s1019_s22 = sadd.s32 1, %s1512_s12  ;;  %s981_s21 = sadd.s32 1, %s1516_s21   ;;  %s1516_s21 = sphi %s1746_s21, %s981_s21   ;;  %s1512_s12 = sphi %s1744_s12, %s1833_s12   ;;  %s1508_s9 = sphi %s1832_s9, %s1024_s9   ;;  %s1504_s27 = sphi %s1831_s27, %s1025_s27  }
 0x2db   : >> { %988 = vst [vmem:[%s1504_s27] sm:$0xff] %v987_v62  ;;  %990 = vst [vmem:[%s1504_s27 + $0x8] sm:$0xff] %v989_v63  ;;  %v993_v1 = vld [vmem:[%s1508_s9 + $0x18] sm:$0xff]  ;;  %v995_v2 = vld [vmem:[%s1508_s9 + $0x20] sm:$0xff]  ;;  %p1020_p11 = scmp.ge.s32.totalorder %s1019_s22, %s1735_s20  ;;  %p980_p12 = scmp.ge.s32.totalorder %s981_s21, %s1735_s20 }
 0x2dc   : >> { %992 = vst [vmem:[%s1504_s27 + $0x10] sm:$0xff] %v991_v0  ;;  %v997_v3 = vld [vmem:[%s1508_s9 + $0x28] sm:$0xff]  ;;  %994 = vst [vmem:[%s1504_s27 + $0x18] sm:$0xff] %v993_v1  ;;  %v999_v4 = vld [vmem:[%s1508_s9 + $0x30] sm:$0xff] }
 0x2dd   : >> { %996 = vst [vmem:[%s1504_s27 + $0x20] sm:$0xff] %v995_v2  ;;  %998 = vst [vmem:[%s1504_s27 + $0x28] sm:$0xff] %v997_v3  ;;  %v1001_v5 = vld [vmem:[%s1508_s9 + $0x38] sm:$0xff]  ;;  %v1003_v6 = vld [vmem:[%s1508_s9 + $0x40] sm:$0xff]  ;;  %s1840_s22 = smov (%p1020_p11, %s1019_s22), 0  ;;  %983 = sbr.rel (!%p980_p12) target bundleno = 730 (0x2da), region = 138 }
 0x2de   : >> { %1000 = vst [vmem:[%s1504_s27 + $0x30] sm:$0xff] %v999_v4  ;;  %1002 = vst [vmem:[%s1504_s27 + $0x38] sm:$0xff] %v1001_v5  ;;  %v1005_v7 = vld [vmem:[%s1508_s9 + $0x48] sm:$0xff]  ;;  %v1007_v8 = vld [vmem:[%s1508_s9 + $0x50] sm:$0xff]  ;;  %s1197_s23 = sshll.u32 %s1840_s22, 7  ;;  %s1833_s12 = smov %s1840_s22 }
 0x2df   : >> { %1004 = vst [vmem:[%s1504_s27 + $0x40] sm:$0xff] %v1003_v6  ;;  %v1009_v9 = vld [vmem:[%s1508_s9 + $0x58] sm:$0xff]  ;;  %1006 = vst [vmem:[%s1504_s27 + $0x48] sm:$0xff] %v1005_v7  ;;  %v1011_v10 = vld [vmem:[%s1508_s9 + $0x60] sm:$0xff] }
 0x2e0   : >> { %1008 = vst [vmem:[%s1504_s27 + $0x50] sm:$0xff] %v1007_v8  ;;  %1010 = vst [vmem:[%s1504_s27 + $0x58] sm:$0xff] %v1009_v9  ;;  %v1013_v11 = vld [vmem:[%s1508_s9 + $0x68] sm:$0xff]  ;;  %v1015_v12 = vld [vmem:[%s1508_s9 + $0x70] sm:$0xff] }
 0x2e1   : >> { %1012 = vst [vmem:[%s1504_s27 + $0x60] sm:$0xff] %v1011_v10  ;;  %1014 = vst [vmem:[%s1504_s27 + $0x68] sm:$0xff] %v1013_v11  ;;  %v1017_v13 = vld [vmem:[%s1508_s9 + $0x78] sm:$0xff]  ;;  %s1024_s9 = scalar_lea.vmem %s1704_s14, %s1197_s23 [#allocation2]  }
 0x2e2   : >> { %1016 = vst [vmem:[%s1504_s27 + $0x70] sm:$0xff] %v1015_v12  ;;  %1018 = vst [vmem:[%s1504_s27 + $0x78] sm:$0xff] %v1017_v13  ;;  %s1025_s27 = scalar_lea.vmem %s1729_s18, %s1197_s23  }
 0x2e4 PF: > { %s1804_s26 = sand.u32 15, %s1838_s24   ;;  %s1208_s29 = sshll.u32 %s1735_s20, 7 }
 0x2e5   : > { %s1030_s30 = scalar_lea.vmem %s1704_s14, %s1208_s29 [#allocation2]   ;;  %s1032_s10 = scalar_lea.vmem %s1729_s18, %s1208_s29  }
 0x2e6   : > { %p1202_p13 = scmp.le.s32.totalorder %s1804_s26, 0 }
 0x2e7   : > { %s1518_s11 = smov (!%p1202_p13), %s1032_s10   ;;  %s1522_s13 = smov (!%p1202_p13), %s1030_s30  }
 0x2e8   : > { %1123 = sbr.rel (%p1202_p13) target bundleno = 761 (0x2f9), region = 143  ;;  %s1526_s15 = smov (!%p1202_p13), 0  }
 0x2e9   : > { %s1530_s16 = smov (!%p1202_p13), 0  }
 0x2ef LB: >> { %v1042_v14 = vld [vmem:[%s1524_s13] sm:$0xff]  ;;  %s1044_s24 = sadd.s32 1, %s1528_s15  ;;  %s1036_s16 = sadd.s32 1, %s1532_s16   ;;  %s1532_s16 = sphi %s1530_s16, %s1036_s16   ;;  %s1528_s15 = sphi %s1526_s15, %s1527_s15   ;;  %s1524_s13 = sphi %s1522_s13, %s1049_s13   ;;  %s1520_s11 = sphi %s1518_s11, %s1050_s11  }
 0x2f0   : >> { %1043 = vst [vmem:[%s1520_s11] sm:$0xff] %v1042_v14  ;;  %p1045_p0 = scmp.ge.s32.totalorder %s1044_s24, %s1804_s26  ;;  %p1035_p1 = scmp.ge.s32.totalorder %s1036_s16, %s1804_s26 }
 0x2f2   : >> { %s1842_s24 = smov (%p1045_p0, %s1044_s24), 0  ;;  %1038 = sbr.rel (!%p1035_p1) target bundleno = 751 (0x2ef), region = 149 }
 0x2f3   : >> { %s1203_s14 = sshll.u32 %s1842_s24, 3  ;;  %s1527_s15 = smov %s1842_s24  }
 0x2f4   : >> { %s1049_s13 = scalar_lea.vmem %s1030_s30, %s1203_s14 [#allocation2]   ;;  %s1050_s11 = scalar_lea.vmem %s1032_s10, %s1203_s14  }
 0x2f9 PF: > { %p14_p2 = scmp.ge.s32.totalorder %s1589_s28, 4   ;;  %s1834_s24 = smov %s1496_s25 }
 0x2fa   : > { %s1835_s25 = smov %s1597_s8  ;;  %s1836_s26 = smov %s1589_s28 }
 0x2fb   :  { %16 = sbr.rel (!%p14_p2) target bundleno = 2 (0x2), region = 160 }

</bundles_post_ra>
